<compile_context>
chip_gen: v6e
topology: v6e:2x2x1
jax: 0.10.0
libtpu: 0.0.40
codegen_flags: <defaults>
</compile_context>

<pallas_src>
import numpy as np
import jax
import jax.numpy as jnp
from jax import lax
from jax.experimental import pallas as pl
from jax.experimental.pallas import tpu as pltpu

LN_EPS = 1e-5          # torch.nn.LayerNorm default
NEG_INF = -1e30        # finite "minus infinity" (softmax math kept in f32)


def _pick_tile(n, pref):
    """Largest of {pref, pref/2, pref/4} dividing n, else the full dim."""
    # TODO(synk): pad instead of falling back to the full dim for awkward sizes.
    for t in (pref, pref // 2, pref // 4):
        if t and n % t == 0:
            return t
    return n


def _tpu_config():
    """Best-effort generation-aware (vmem_limit_bytes, attention tile pref)."""
    try:
        info = pltpu.get_tpu_info()
        vmem_limit = int(int(info.vmem_capacity_bytes) * 0.85)  # leave headroom
        name = str(info).lower()
    except Exception:
        vmem_limit = 64 * 1024 * 1024
        name = ""
    # v5e MXU is 128 wide -> 128 tiles already saturate it; v6e/v7x are 256 wide.
    attn_pref = 128 if "v5" in name else 256
    return vmem_limit, attn_pref


_SINGLE_BUF_KWARGS = None


def _single_buffer_kwargs():
    """{'pipeline_mode': pl.Buffered(1)} if supported on this JAX/TPU, else {}.

    Constant-index weight BlockSpecs never change block index, so double
    buffering only doubles their VMEM footprint.  Probed once with a tiny
    kernel so an unsupported feature can never break the real kernels.
    """
    global _SINGLE_BUF_KWARGS
    if _SINGLE_BUF_KWARGS is None:
        try:
            def _k(x_ref, o_ref):
                o_ref[...] = x_ref[...] * 2.0
            out = pl.pallas_call(
                _k,
                out_shape=jax.ShapeDtypeStruct((16, 128), jnp.float32),
                grid=(2,),
                in_specs=[pl.BlockSpec((8, 128), lambda i: (0, 0),
                                       pipeline_mode=pl.Buffered(1))],
                out_specs=pl.BlockSpec((8, 128), lambda i: (i, 0)),
            )(jnp.ones((8, 128), jnp.float32))
            jax.block_until_ready(out)
            _SINGLE_BUF_KWARGS = {"pipeline_mode": pl.Buffered(1)}
        except Exception:
            _SINGLE_BUF_KWARGS = {}
    return _SINGLE_BUF_KWARGS


# --------------------------------------------------------------------------- #
# Kernel A: LayerNorm + fused QKV projection                                   #
# --------------------------------------------------------------------------- #
def _ln_qkv_kernel(x_ref, g_ref, b_ref, w_ref, bias_ref, q_ref, k_ref, v_ref):
    D = q_ref.shape[-1]
    x = x_ref[0].astype(jnp.float32)                        # (tr, D)
    mu = jnp.mean(x, axis=-1, keepdims=True)
    var = jnp.mean(jnp.square(x - mu), axis=-1, keepdims=True)
    xn = (x - mu) * lax.rsqrt(var + LN_EPS)
    xn = xn * g_ref[...] + b_ref[...]
    # one fused (tr, D) @ (D, 3D) MXU matmul, f32 accumulate
    y = jnp.dot(xn.astype(jnp.bfloat16), w_ref[...],
                preferred_element_type=jnp.float32) + bias_ref[...]
    q_ref[0] = y[:, :D].astype(q_ref.dtype)
    k_ref[0] = y[:, D:2 * D].astype(k_ref.dtype)
    v_ref[0] = y[:, 2 * D:3 * D].astype(v_ref.dtype)


# --------------------------------------------------------------------------- #
# Kernel B: flash attention (causal, online softmax) + out_proj + residual     #
# --------------------------------------------------------------------------- #
def _make_attn_kernel(n_heads, head_dim, tq, tk):
    assert tq == tk

    def kernel(q_ref, k_ref, v_ref, res_ref, wo_ref, bo_ref, o_ref,
               m_sc, l_sc, acc_sc):
        qi = pl.program_id(1)
        ki = pl.program_id(2)

        @pl.when(ki == 0)
        def _init():
            m_sc[...] = jnp.full_like(m_sc, NEG_INF)
            l_sc[...] = jnp.zeros_like(l_sc)
            acc_sc[...] = jnp.zeros_like(acc_sc)

        def update(masked):
            q = q_ref[0]                                    # (tq, D) bf16
            k = k_ref[0]                                    # (tk, D) bf16
            v = v_ref[0]                                    # (tk, D) bf16
            if masked:   # only the diagonal tile needs the causal mask
                rows = lax.broadcasted_iota(jnp.int32, (tq, tk), 0)
                cols = lax.broadcasted_iota(jnp.int32, (tq, tk), 1)
                keep = cols <= rows
            # Per-head loop keeps live score/prob intermediates at (tq, tk)
            # instead of (H, tq, tk); q/k/v/acc stay in row (tq, D) layout.
            for h in range(n_heads):
                c0, c1 = h * head_dim, (h + 1) * head_dim
                s = lax.dot_general(q[:, c0:c1], k[:, c0:c1],
                                    (((1,), (1,)), ((), ())),
                                    preferred_element_type=jnp.float32)
                if masked:
                    s = jnp.where(keep, s, NEG_INF)
                m_prev = m_sc[:, h:h + 1]
                m_new = jnp.maximum(m_prev, jnp.max(s, axis=-1, keepdims=True))
                alpha = jnp.exp(m_prev - m_new)
                p = jnp.exp(s - m_new)
                l_sc[:, h:h + 1] = (alpha * l_sc[:, h:h + 1]
                                    + jnp.sum(p, axis=-1, keepdims=True))
                acc_sc[:, c0:c1] = alpha * acc_sc[:, c0:c1] + jnp.dot(
                    p.astype(jnp.bfloat16), v[:, c0:c1],
                    preferred_element_type=jnp.float32)
                m_sc[:, h:h + 1] = m_new

        # strictly-below-diagonal kv tiles: no masking work at all
        @pl.when(ki < qi)
        def _interior():
            update(masked=False)

        # diagonal tile: masked update, then finalize (it is the last
        # contributing kv tile for this q tile; later kv steps are no-ops
        # and their K/V DMAs are suppressed by the clamped index_map).
        @pl.when(ki == qi)
        def _diag_and_finalize():
            update(masked=True)
            inv_l = pl.reciprocal(l_sc[...], approx=True)    # (tq, H)
            for h in range(n_heads):
                c0, c1 = h * head_dim, (h + 1) * head_dim
                acc_sc[:, c0:c1] = acc_sc[:, c0:c1] * inv_l[:, h:h + 1]
            ctx = acc_sc[...].astype(jnp.bfloat16)           # (tq, D)
            # single K=D out_proj matmul (no per-head accumulation chain)
            out = jnp.dot(ctx, wo_ref[...],
                          preferred_element_type=jnp.float32) + bo_ref[...]
            o_ref[0] = (res_ref[0].astype(jnp.float32) + out).astype(o_ref.dtype)

    return kernel


# --------------------------------------------------------------------------- #
# Kernel C: LayerNorm + fc1 + ReLU + fc2 + residual, tiled over FFN dim        #
# --------------------------------------------------------------------------- #
def _ln_mlp_kernel(x_ref, g_ref, b_ref, w1_ref, b1_ref, w2_ref, b2_ref, o_ref,
                   xn_sc, acc_sc):
    f = pl.program_id(1)

    @pl.when(f == 0)
    def _init():
        x = x_ref[...].astype(jnp.float32)                  # (tm, D)
        mu = jnp.mean(x, axis=-1, keepdims=True)
        var = jnp.mean(jnp.square(x - mu), axis=-1, keepdims=True)
        xn = (x - mu) * lax.rsqrt(var + LN_EPS)
        xn_sc[...] = (xn * g_ref[...] + b_ref[...]).astype(xn_sc.dtype)
        acc_sc[...] = jnp.zeros_like(acc_sc)

    # fc1 chunk + ReLU + fc2 partial sum (weights stream in FFN chunks)
    h = jnp.dot(xn_sc[...], w1_ref[...],
                preferred_element_type=jnp.float32) + b1_ref[...]
    h = jnp.maximum(h, 0.0)
    acc_sc[...] += jnp.dot(h.astype(jnp.bfloat16), w2_ref[...],
                           preferred_element_type=jnp.float32)

    @pl.when(f == pl.num_programs(1) - 1)
    def _finalize():
        o_ref[...] = (x_ref[...].astype(jnp.float32) + acc_sc[...]
                      + b2_ref[...]).astype(o_ref.dtype)


# --------------------------------------------------------------------------- #
# Wrapper                                                                      #
# --------------------------------------------------------------------------- #
def opt_decoder_layer_forward(x, params, n_heads):
    """x: (B, T, D) f32. params: torch-layout weights (out, in) and biases."""
    B, T, D = x.shape
    head_dim = D // n_heads
    ffn = params["w1"].shape[0]
    scale = 1.0 / (head_dim ** 0.5)
    f32, bf16 = jnp.float32, jnp.bfloat16

    vmem_limit, attn_pref = _tpu_config()
    sbuf = _single_buffer_kwargs()   # single-buffer constant-index weights

    # torch Linear: y = x @ W^T + b.  Pre-transpose to (in, out), cast to bf16.
    # Fused QKV weight; 1/sqrt(hd) folded into the Q columns / Q bias.
    wqkv = jnp.concatenate(
        [params["wq"].T * scale, params["wk"].T, params["wv"].T],
        axis=1).astype(bf16)                                  # (D, 3D)
    bqkv = jnp.concatenate(
        [params["bq"] * scale, params["bk"], params["bv"]]
    ).reshape(1, 3 * D).astype(f32)
    wo = params["wo"].T.astype(bf16)                          # (D, D)
    bo = params["bo"].reshape(1, D).astype(f32)
    w1 = params["w1"].T.astype(bf16)                          # (D, ffn)
    b1 = params["b1"].reshape(1, ffn).astype(f32)
    w2 = params["w2"].T.astype(bf16)                          # (ffn, D)
    b2 = params["b2"].reshape(1, D).astype(f32)
    ln1_g = params["ln1_g"].reshape(1, D).astype(f32)
    ln1_b = params["ln1_b"].reshape(1, D).astype(f32)
    ln2_g = params["ln2_g"].reshape(1, D).astype(f32)
    ln2_b = params["ln2_b"].reshape(1, D).astype(f32)

    # ---------------- Kernel A: LN1 + fused QKV ----------------
    tr = _pick_tile(T, 256)
    row_blk = pl.BlockSpec((1, tr, D), lambda b, i: (b, i, 0))
    vec_d = pl.BlockSpec((1, D), lambda b, i: (0, 0))
    q, k, v = pl.pallas_call(
        _ln_qkv_kernel,
        out_shape=(jax.ShapeDtypeStruct((B, T, D), bf16),) * 3,
        grid_spec=pltpu.PrefetchScalarGridSpec(
            num_scalar_prefetch=0,
            grid=(B, T // tr),
            in_specs=[row_blk, vec_d, vec_d,
                      pl.BlockSpec((D, 3 * D), lambda b, i: (0, 0), **sbuf),
                      pl.BlockSpec((1, 3 * D), lambda b, i: (0, 0))],
            out_specs=[row_blk, row_blk, row_blk],
        ),
        compiler_params=pltpu.CompilerParams(
            dimension_semantics=("parallel", "parallel"),
            vmem_limit_bytes=vmem_limit),
        cost_estimate=pl.CostEstimate(
            flops=6 * B * T * D * D,
            transcendentals=0,
            bytes_accessed=B * T * D * 4 + 3 * D * D * 2 + 3 * B * T * D * 2),
    )(x, ln1_g, ln1_b, wqkv, bqkv)

    # ---------------- Kernel B: flash attention + out_proj + residual ---------
    tq = _pick_tile(T, attn_pref)
    tk = tq                                  # equal tiles keep causal logic simple
    n_q, n_kv = T // tq, T // tk
    q_blk = pl.BlockSpec((1, tq, D), lambda b, i, j: (b, i, 0))
    # Clamp: above-diagonal kv tiles keep the same block index as the diagonal
    # tile, so the pipeline never re-DMAs K/V for skipped causal tiles.
    kv_blk = pl.BlockSpec((1, tk, D), lambda b, i, j: (b, jnp.minimum(j, i), 0))
    res_blk = pl.BlockSpec((1, tq, D), lambda b, i, j: (b, i, 0))
    x_attn = pl.pallas_call(
        _make_attn_kernel(n_heads, head_dim, tq, tk),
        out_shape=jax.ShapeDtypeStruct((B, T, D), x.dtype),
        grid_spec=pltpu.PrefetchScalarGridSpec(
            num_scalar_prefetch=0,
            grid=(B, n_q, n_kv),
            in_specs=[q_blk, kv_blk, kv_blk, res_blk,
                      pl.BlockSpec((D, D), lambda b, i, j: (0, 0), **sbuf),
                      pl.BlockSpec((1, D), lambda b, i, j: (0, 0))],
            out_specs=res_blk,
            scratch_shapes=[pltpu.VMEM((tq, n_heads), f32),      # m
                            pltpu.VMEM((tq, n_heads), f32),      # l
                            pltpu.VMEM((tq, D), f32)],           # acc (row layout)
        ),
        compiler_params=pltpu.CompilerParams(
            dimension_semantics=("parallel", "parallel", "arbitrary"),
            vmem_limit_bytes=vmem_limit),
        cost_estimate=pl.CostEstimate(
            flops=2 * B * T * T * D + 2 * B * T * D * D,          # causal ~half QK/PV
            transcendentals=B * n_heads * T * T // 2,
            bytes_accessed=(3 * B * T * D * 2) // 2 + 2 * B * T * D * 4 + D * D * 2),
    )(q, k, v, x, wo, bo)

    # ---------------- Kernel C: LN2 + MLP + residual (FFN-tiled) --------------
    BT = B * T
    x2 = x_attn.reshape(BT, D)
    tm = _pick_tile(BT, 256)
    tf = _pick_tile(ffn, 512)
    row2 = pl.BlockSpec((tm, D), lambda i, f: (i, 0))
    out2 = pl.pallas_call(
        _ln_mlp_kernel,
        out_shape=jax.ShapeDtypeStruct((BT, D), x.dtype),
        grid_spec=pltpu.PrefetchScalarGridSpec(
            num_scalar_prefetch=0,
            grid=(BT // tm, ffn // tf),
            in_specs=[row2,
                      pl.BlockSpec((1, D), lambda i, f: (0, 0)),
                      pl.BlockSpec((1, D), lambda i, f: (0, 0)),
                      pl.BlockSpec((D, tf), lambda i, f: (0, f)),
                      pl.BlockSpec((1, tf), lambda i, f: (0, f)),
                      pl.BlockSpec((tf, D), lambda i, f: (f, 0)),
                      pl.BlockSpec((1, D), lambda i, f: (0, 0))],
            out_specs=row2,
            scratch_shapes=[pltpu.VMEM((tm, D), bf16),           # cached LN rows
                            pltpu.VMEM((tm, D), f32)],           # fc2 accumulator
        ),
        compiler_params=pltpu.CompilerParams(
            dimension_semantics=("parallel", "arbitrary"),
            vmem_limit_bytes=vmem_limit),
        cost_estimate=pl.CostEstimate(
            flops=4 * BT * D * ffn,
            transcendentals=0,
            bytes_accessed=2 * BT * D * 4 + 2 * D * ffn * 2),
    )(x2, ln2_g, ln2_b, w1, b1, w2, b2)

    return out2.reshape(B, T, D)


# --------------------------------------------------------------------------- #
# Pure-JAX f32 reference mirroring the PyTorch module (eval mode, causal)      #
# --------------------------------------------------------------------------- #
def reference_forward(x, p, n_heads):
    B, T, D = x.shape
    hd = D // n_heads

    def ln(v, g, b):
        mu = v.mean(-1, keepdims=True)
        var = ((v - mu) ** 2).mean(-1, keepdims=True)
        return (v - mu) / jnp.sqrt(var + LN_EPS) * g + b

    residual = x
    h = ln(x, p["ln1_g"], p["ln1_b"])
    q = h @ p["wq"].T + p["bq"]
    k = h @ p["wk"].T + p["bk"]
    v = h @ p["wv"].T + p["bv"]
    q = q.reshape(B, T, n_heads, hd).transpose(0, 2, 1, 3)
    k = k.reshape(B, T, n_heads, hd).transpose(0, 2, 1, 3)
    v = v.reshape(B, T, n_heads, hd).transpose(0, 2, 1, 3)
    s = jnp.einsum("bhqd,bhkd->bhqk", q, k) / (hd ** 0.5)
    mask = jnp.tril(jnp.ones((T, T), dtype=bool))
    s = jnp.where(mask, s, -jnp.inf)
    pr = jax.nn.softmax(s, axis=-1)
    ctx = jnp.einsum("bhqk,bhkd->bhqd", pr, v)
    ctx = ctx.transpose(0, 2, 1, 3).reshape(B, T, D)
    x1 = residual + (ctx @ p["wo"].T + p["bo"])

    residual = x1
    h = ln(x1, p["ln2_g"], p["ln2_b"])
    h = jnp.maximum(h @ p["w1"].T + p["b1"], 0.0)
    h = h @ p["w2"].T + p["b2"]
    return residual + h


if __name__ == "__main__":
    # Small shapes consistent with the module: batch=2, seq=8, hidden=32,
    # heads=4, ffn=64 (eval mode).
    B, T, D, n_heads, ffn = 2, 8, 32, 4, 64

    key = jax.random.PRNGKey(0)
    ks = jax.random.split(key, 20)

    def rnd(k, shape, s=0.05):
        return jax.random.normal(k, shape, jnp.float32) * s

    # torch nn.Linear layout: W is (out_features, in_features)
    params = {
        "wq": rnd(ks[0], (D, D)), "bq": rnd(ks[1], (D,)),
        "wk": rnd(ks[2], (D, D)), "bk": rnd(ks[3], (D,)),
        "wv": rnd(ks[4], (D, D)), "bv": rnd(ks[5], (D,)),
        "wo": rnd(ks[6], (D, D)), "bo": rnd(ks[7], (D,)),
        "w1": rnd(ks[8], (ffn, D)), "b1": rnd(ks[9], (ffn,)),
        "w2": rnd(ks[10], (D, ffn)), "b2": rnd(ks[11], (D,)),
        "ln1_g": 1.0 + rnd(ks[12], (D,)), "ln1_b": rnd(ks[13], (D,)),
        "ln2_g": 1.0 + rnd(ks[14], (D,)), "ln2_b": rnd(ks[15], (D,)),
    }
    x = jax.random.normal(ks[16], (B, T, D), jnp.float32)

    fwd = jax.jit(opt_decoder_layer_forward, static_argnums=(2,))
    out = jax.block_until_ready(fwd(x, params, n_heads))

    ref = reference_forward(x, params, n_heads)
    # bf16 MXU inputs (f32 accumulate / f32 softmax) -> bf16-level tolerance.
    np.testing.assert_allclose(np.asarray(out), np.asarray(ref),
                               rtol=2e-2, atol=2e-2)

    print("KERNEL_OK")
</pallas_src>

<mosaic_0001>
module attributes {stable_mosaic.version = 11 : i64} {
  func.func @_ln_qkv_kernel(%arg0: i32, %arg1: i32, %arg2: memref<1x8x32xf32, #tpu.memory_space<vmem>>, %arg3: memref<1x32xf32, #tpu.memory_space<vmem>>, %arg4: memref<1x32xf32, #tpu.memory_space<vmem>>, %arg5: memref<32x96xbf16, #tpu.memory_space<vmem>>, %arg6: memref<1x96xf32, #tpu.memory_space<vmem>>, %arg7: memref<1x8x32xbf16, #tpu.memory_space<vmem>>, %arg8: memref<1x8x32xbf16, #tpu.memory_space<vmem>>, %arg9: memref<1x8x32xbf16, #tpu.memory_space<vmem>>) attributes {dimension_semantics = [#tpu.dimension_semantics<parallel>, #tpu.dimension_semantics<parallel>], iteration_bounds = array<i64: 2, 1>, scalar_prefetch = 0 : i64, scratch_operands = 0 : i64, tpu.core_type = #tpu.core_type<tc>, window_params = [{transform_indices = @transform_0, window_bounds = array<i64: 1, 8, 32>}, {pipeline_mode = #tpu.pipeline_mode<synchronous>, transform_indices = @transform_1, window_bounds = array<i64: 1, 32>}, {pipeline_mode = #tpu.pipeline_mode<synchronous>, transform_indices = @transform_2, window_bounds = array<i64: 1, 32>}, {pipeline_mode = #tpu.pipeline_mode<synchronous>, transform_indices = @transform_3, window_bounds = array<i64: 32, 96>}, {pipeline_mode = #tpu.pipeline_mode<synchronous>, transform_indices = @transform_4, window_bounds = array<i64: 1, 96>}, {transform_indices = @transform_5, window_bounds = array<i64: 1, 8, 32>}, {transform_indices = @transform_6, window_bounds = array<i64: 1, 8, 32>}, {transform_indices = @transform_7, window_bounds = array<i64: 1, 8, 32>}]} {
    %c0 = arith.constant 0 : index
    %c0_0 = arith.constant 0 : index
    %c0_1 = arith.constant 0 : index
    %0 = vector.load %arg2[%c0, %c0_0, %c0_1] : memref<1x8x32xf32, #tpu.memory_space<vmem>>, vector<1x8x32xf32>
    %1 = vector.shape_cast %0 : vector<1x8x32xf32> to vector<8x32xf32>
    %cst = arith.constant dense<0.000000e+00> : vector<8xf32>
    %2 = vector.multi_reduction <add>, %1, %cst [1] : vector<8x32xf32> to vector<8xf32>
    %3 = vector.shape_cast %2 : vector<8xf32> to vector<8x1xf32>
    %cst_2 = arith.constant 3.200000e+01 : f32
    %4 = vector.broadcast %cst_2 : f32 to vector<8x1xf32>
    %5 = arith.divf %3, %4 : vector<8x1xf32>
    %6 = vector.broadcast %5 : vector<8x1xf32> to vector<8x32xf32>
    %7 = arith.subf %1, %6 : vector<8x32xf32>
    %8 = arith.mulf %7, %7 : vector<8x32xf32>
    %cst_3 = arith.constant dense<0.000000e+00> : vector<8xf32>
    %9 = vector.multi_reduction <add>, %8, %cst_3 [1] : vector<8x32xf32> to vector<8xf32>
    %10 = vector.shape_cast %9 : vector<8xf32> to vector<8x1xf32>
    %cst_4 = arith.constant 3.200000e+01 : f32
    %11 = vector.broadcast %cst_4 : f32 to vector<8x1xf32>
    %12 = arith.divf %10, %11 : vector<8x1xf32>
    %13 = vector.broadcast %5 : vector<8x1xf32> to vector<8x32xf32>
    %14 = arith.subf %1, %13 : vector<8x32xf32>
    %cst_5 = arith.constant 9.99999974E-6 : f32
    %15 = vector.broadcast %cst_5 : f32 to vector<8x1xf32>
    %16 = arith.addf %12, %15 : vector<8x1xf32>
    %17 = math.rsqrt %16 : vector<8x1xf32>
    %18 = vector.broadcast %17 : vector<8x1xf32> to vector<8x32xf32>
    %19 = arith.mulf %14, %18 : vector<8x32xf32>
    %c0_6 = arith.constant 0 : index
    %c0_7 = arith.constant 0 : index
    %20 = vector.load %arg3[%c0_6, %c0_7] : memref<1x32xf32, #tpu.memory_space<vmem>>, vector<1x32xf32>
    %21 = vector.broadcast %20 : vector<1x32xf32> to vector<8x32xf32>
    %22 = arith.mulf %19, %21 : vector<8x32xf32>
    %c0_8 = arith.constant 0 : index
    %c0_9 = arith.constant 0 : index
    %23 = vector.load %arg4[%c0_8, %c0_9] : memref<1x32xf32, #tpu.memory_space<vmem>>, vector<1x32xf32>
    %24 = vector.broadcast %23 : vector<1x32xf32> to vector<8x32xf32>
    %25 = arith.addf %22, %24 : vector<8x32xf32>
    %26 = arith.truncf %25 : vector<8x32xf32> to vector<8x32xbf16>
    %c0_10 = arith.constant 0 : index
    %c0_11 = arith.constant 0 : index
    %27 = vector.load %arg5[%c0_10, %c0_11] : memref<32x96xbf16, #tpu.memory_space<vmem>>, vector<32x96xbf16>
    %cst_12 = arith.constant dense<0.000000e+00> : vector<8x96xf32>
    %28 = tpu.matmul %26, %27, %cst_12 {dimension_numbers = #tpu.dot_dimension_numbers<[1], [0], [0], [1], [0, 0, 1, 1], [], []>} : vector<8x32xbf16>, vector<32x96xbf16>, vector<8x96xf32> -> vector<8x96xf32>
    %c0_13 = arith.constant 0 : index
    %c0_14 = arith.constant 0 : index
    %29 = vector.load %arg6[%c0_13, %c0_14] : memref<1x96xf32, #tpu.memory_space<vmem>>, vector<1x96xf32>
    %30 = vector.broadcast %29 : vector<1x96xf32> to vector<8x96xf32>
    %31 = arith.addf %28, %30 : vector<8x96xf32>
    %32 = vector.extract_strided_slice %31 {offsets = [0, 0], sizes = [8, 32], strides = [1, 1]} : vector<8x96xf32> to vector<8x32xf32>
    %33 = arith.truncf %32 : vector<8x32xf32> to vector<8x32xbf16>
    %c0_15 = arith.constant 0 : index
    %c0_16 = arith.constant 0 : index
    %c0_17 = arith.constant 0 : index
    %34 = vector.load %arg7[%c0_15, %c0_16, %c0_17] : memref<1x8x32xbf16, #tpu.memory_space<vmem>>, vector<1x8x32xbf16>
    %35 = vector.shape_cast %34 : vector<1x8x32xbf16> to vector<8x32xbf16>
    %36 = vector.shape_cast %33 : vector<8x32xbf16> to vector<1x8x32xbf16>
    tpu.vector_store %arg7[%c0_15, %c0_16, %c0_17], %36 {strides = array<i32>} : memref<1x8x32xbf16, #tpu.memory_space<vmem>>, vector<1x8x32xbf16>,
    %37 = vector.extract_strided_slice %31 {offsets = [0, 32], sizes = [8, 32], strides = [1, 1]} : vector<8x96xf32> to vector<8x32xf32>
    %38 = arith.truncf %37 : vector<8x32xf32> to vector<8x32xbf16>
    %c0_18 = arith.constant 0 : index
    %c0_19 = arith.constant 0 : index
    %c0_20 = arith.constant 0 : index
    %39 = vector.load %arg8[%c0_18, %c0_19, %c0_20] : memref<1x8x32xbf16, #tpu.memory_space<vmem>>, vector<1x8x32xbf16>
    %40 = vector.shape_cast %39 : vector<1x8x32xbf16> to vector<8x32xbf16>
    %41 = vector.shape_cast %38 : vector<8x32xbf16> to vector<1x8x32xbf16>
    tpu.vector_store %arg8[%c0_18, %c0_19, %c0_20], %41 {strides = array<i32>} : memref<1x8x32xbf16, #tpu.memory_space<vmem>>, vector<1x8x32xbf16>,
    %42 = vector.extract_strided_slice %31 {offsets = [0, 64], sizes = [8, 32], strides = [1, 1]} : vector<8x96xf32> to vector<8x32xf32>
    %43 = arith.truncf %42 : vector<8x32xf32> to vector<8x32xbf16>
    %c0_21 = arith.constant 0 : index
    %c0_22 = arith.constant 0 : index
    %c0_23 = arith.constant 0 : index
    %44 = vector.load %arg9[%c0_21, %c0_22, %c0_23] : memref<1x8x32xbf16, #tpu.memory_space<vmem>>, vector<1x8x32xbf16>
    %45 = vector.shape_cast %44 : vector<1x8x32xbf16> to vector<8x32xbf16>
    %46 = vector.shape_cast %43 : vector<8x32xbf16> to vector<1x8x32xbf16>
    tpu.vector_store %arg9[%c0_21, %c0_22, %c0_23], %46 {strides = array<i32>} : memref<1x8x32xbf16, #tpu.memory_space<vmem>>, vector<1x8x32xbf16>,
    return
  }
  func.func @transform_0(%arg0: i32, %arg1: i32) -> (i32, i32, i32) {
    %c0_i32 = arith.constant 0 : i32
    %c0_i32_0 = arith.constant 0 : i32
    return %arg0, %arg1, %c0_i32 : i32, i32, i32
  }
  func.func @transform_1(%arg0: i32, %arg1: i32) -> (i32, i32) {
    %c0_i32 = arith.constant 0 : i32
    %c0_i32_0 = arith.constant 0 : i32
    %c0_i32_1 = arith.constant 0 : i32
    return %c0_i32, %c0_i32_0 : i32, i32
  }
  func.func @transform_2(%arg0: i32, %arg1: i32) -> (i32, i32) {
    %c0_i32 = arith.constant 0 : i32
    %c0_i32_0 = arith.constant 0 : i32
    %c0_i32_1 = arith.constant 0 : i32
    return %c0_i32, %c0_i32_0 : i32, i32
  }
  func.func @transform_3(%arg0: i32, %arg1: i32) -> (i32, i32) {
    %c0_i32 = arith.constant 0 : i32
    %c0_i32_0 = arith.constant 0 : i32
    %c0_i32_1 = arith.constant 0 : i32
    return %c0_i32, %c0_i32_0 : i32, i32
  }
  func.func @transform_4(%arg0: i32, %arg1: i32) -> (i32, i32) {
    %c0_i32 = arith.constant 0 : i32
    %c0_i32_0 = arith.constant 0 : i32
    %c0_i32_1 = arith.constant 0 : i32
    return %c0_i32, %c0_i32_0 : i32, i32
  }
  func.func @transform_5(%arg0: i32, %arg1: i32) -> (i32, i32, i32) {
    %c0_i32 = arith.constant 0 : i32
    %c0_i32_0 = arith.constant 0 : i32
    return %arg0, %arg1, %c0_i32 : i32, i32, i32
  }
  func.func @transform_6(%arg0: i32, %arg1: i32) -> (i32, i32, i32) {
    %c0_i32 = arith.constant 0 : i32
    %c0_i32_0 = arith.constant 0 : i32
    return %arg0, %arg1, %c0_i32 : i32, i32, i32
  }
  func.func @transform_7(%arg0: i32, %arg1: i32) -> (i32, i32, i32) {
    %c0_i32 = arith.constant 0 : i32
    %c0_i32_0 = arith.constant 0 : i32
    return %arg0, %arg1, %c0_i32 : i32, i32, i32
  }
}

module attributes {stable_mosaic.version = 11 : i64} {
  func.func @_ln_mlp_kernel(%arg0: i32, %arg1: i32, %arg2: memref<16x32xf32, #tpu.memory_space<vmem>>, %arg3: memref<1x32xf32, #tpu.memory_space<vmem>>, %arg4: memref<1x32xf32, #tpu.memory_space<vmem>>, %arg5: memref<32x64xbf16, #tpu.memory_space<vmem>>, %arg6: memref<1x64xf32, #tpu.memory_space<vmem>>, %arg7: memref<64x32xbf16, #tpu.memory_space<vmem>>, %arg8: memref<1x32xf32, #tpu.memory_space<vmem>>, %arg9: memref<16x32xf32, #tpu.memory_space<vmem>>, %arg10: memref<16x32xbf16, #tpu.memory_space<vmem>>, %arg11: memref<16x32xf32, #tpu.memory_space<vmem>>) attributes {dimension_semantics = [#tpu.dimension_semantics<parallel>, #tpu.dimension_semantics<arbitrary>], iteration_bounds = array<i64: 1, 1>, scalar_prefetch = 0 : i64, scratch_operands = 2 : i64, tpu.core_type = #tpu.core_type<tc>, window_params = [{transform_indices = @transform_0, window_bounds = array<i64: 16, 32>}, {pipeline_mode = #tpu.pipeline_mode<synchronous>, transform_indices = @transform_1, window_bounds = array<i64: 1, 32>}, {pipeline_mode = #tpu.pipeline_mode<synchronous>, transform_indices = @transform_2, window_bounds = array<i64: 1, 32>}, {transform_indices = @transform_3, window_bounds = array<i64: 32, 64>}, {transform_indices = @transform_4, window_bounds = array<i64: 1, 64>}, {transform_indices = @transform_5, window_bounds = array<i64: 64, 32>}, {pipeline_mode = #tpu.pipeline_mode<synchronous>, transform_indices = @transform_6, window_bounds = array<i64: 1, 32>}, {transform_indices = @transform_7, window_bounds = array<i64: 16, 32>}]} {
    %c0_i32 = arith.constant 0 : i32
    %0 = arith.cmpi eq, %arg1, %c0_i32 : i32
    %1 = arith.extui %0 : i1 to i32
    %c0_i32_0 = arith.constant 0 : i32
    %2 = arith.cmpi ne, %1, %c0_i32_0 : i32
    scf.if %2 {
      %c0_16 = arith.constant 0 : index
      %c0_17 = arith.constant 0 : index
      %20 = vector.load %arg2[%c0_16, %c0_17] : memref<16x32xf32, #tpu.memory_space<vmem>>, vector<16x32xf32>
      %cst_18 = arith.constant dense<0.000000e+00> : vector<16xf32>
      %21 = vector.multi_reduction <add>, %20, %cst_18 [1] : vector<16x32xf32> to vector<16xf32>
      %22 = vector.shape_cast %21 : vector<16xf32> to vector<16x1xf32>
      %cst_19 = arith.constant 3.200000e+01 : f32
      %23 = vector.broadcast %cst_19 : f32 to vector<16x1xf32>
      %24 = arith.divf %22, %23 : vector<16x1xf32>
      %25 = vector.broadcast %24 : vector<16x1xf32> to vector<16x32xf32>
      %26 = arith.subf %20, %25 : vector<16x32xf32>
      %27 = arith.mulf %26, %26 : vector<16x32xf32>
      %cst_20 = arith.constant dense<0.000000e+00> : vector<16xf32>
      %28 = vector.multi_reduction <add>, %27, %cst_20 [1] : vector<16x32xf32> to vector<16xf32>
      %29 = vector.shape_cast %28 : vector<16xf32> to vector<16x1xf32>
      %cst_21 = arith.constant 3.200000e+01 : f32
      %30 = vector.broadcast %cst_21 : f32 to vector<16x1xf32>
      %31 = arith.divf %29, %30 : vector<16x1xf32>
      %32 = vector.broadcast %24 : vector<16x1xf32> to vector<16x32xf32>
      %33 = arith.subf %20, %32 : vector<16x32xf32>
      %cst_22 = arith.constant 9.99999974E-6 : f32
      %34 = vector.broadcast %cst_22 : f32 to vector<16x1xf32>
      %35 = arith.addf %31, %34 : vector<16x1xf32>
      %36 = math.rsqrt %35 : vector<16x1xf32>
      %37 = vector.broadcast %36 : vector<16x1xf32> to vector<16x32xf32>
      %38 = arith.mulf %33, %37 : vector<16x32xf32>
      %c0_23 = arith.constant 0 : index
      %c0_24 = arith.constant 0 : index
      %39 = vector.load %arg3[%c0_23, %c0_24] : memref<1x32xf32, #tpu.memory_space<vmem>>, vector<1x32xf32>
      %40 = vector.broadcast %39 : vector<1x32xf32> to vector<16x32xf32>
      %41 = arith.mulf %38, %40 : vector<16x32xf32>
      %c0_25 = arith.constant 0 : index
      %c0_26 = arith.constant 0 : index
      %42 = vector.load %arg4[%c0_25, %c0_26] : memref<1x32xf32, #tpu.memory_space<vmem>>, vector<1x32xf32>
      %43 = vector.broadcast %42 : vector<1x32xf32> to vector<16x32xf32>
      %44 = arith.addf %41, %43 : vector<16x32xf32>
      %45 = arith.truncf %44 : vector<16x32xf32> to vector<16x32xbf16>
      %c0_27 = arith.constant 0 : index
      %c0_28 = arith.constant 0 : index
      %46 = vector.load %arg10[%c0_27, %c0_28] : memref<16x32xbf16, #tpu.memory_space<vmem>>, vector<16x32xbf16>
      tpu.vector_store %arg10[%c0_27, %c0_28], %45 {strides = array<i32>} : memref<16x32xbf16, #tpu.memory_space<vmem>>, vector<16x32xbf16>,
      %cst_29 = arith.constant 0.000000e+00 : f32
      %47 = vector.broadcast %cst_29 : f32 to vector<16x32xf32>
      %c0_30 = arith.constant 0 : index
      %c0_31 = arith.constant 0 : index
      %48 = vector.load %arg11[%c0_30, %c0_31] : memref<16x32xf32, #tpu.memory_space<vmem>>, vector<16x32xf32>
      tpu.vector_store %arg11[%c0_30, %c0_31], %47 {strides = array<i32>} : memref<16x32xf32, #tpu.memory_space<vmem>>, vector<16x32xf32>,
    } else {
    }
    %c0 = arith.constant 0 : index
    %c0_1 = arith.constant 0 : index
    %3 = vector.load %arg10[%c0, %c0_1] : memref<16x32xbf16, #tpu.memory_space<vmem>>, vector<16x32xbf16>
    %c0_2 = arith.constant 0 : index
    %c0_3 = arith.constant 0 : index
    %4 = vector.load %arg5[%c0_2, %c0_3] : memref<32x64xbf16, #tpu.memory_space<vmem>>, vector<32x64xbf16>
    %cst = arith.constant dense<0.000000e+00> : vector<16x64xf32>
    %5 = tpu.matmul %3, %4, %cst {dimension_numbers = #tpu.dot_dimension_numbers<[1], [0], [0], [1], [0, 0, 1, 1], [], []>} : vector<16x32xbf16>, vector<32x64xbf16>, vector<16x64xf32> -> vector<16x64xf32>
    %c0_4 = arith.constant 0 : index
    %c0_5 = arith.constant 0 : index
    %6 = vector.load %arg6[%c0_4, %c0_5] : memref<1x64xf32, #tpu.memory_space<vmem>>, vector<1x64xf32>
    %7 = vector.broadcast %6 : vector<1x64xf32> to vector<16x64xf32>
    %8 = arith.addf %5, %7 : vector<16x64xf32>
    %cst_6 = arith.constant 0.000000e+00 : f32
    %9 = vector.broadcast %cst_6 : f32 to vector<16x64xf32>
    %10 = arith.maximumf %8, %9 : vector<16x64xf32>
    %c0_7 = arith.constant 0 : index
    %c0_8 = arith.constant 0 : index
    %11 = vector.load %arg11[%c0_7, %c0_8] : memref<16x32xf32, #tpu.memory_space<vmem>>, vector<16x32xf32>
    %12 = arith.truncf %10 : vector<16x64xf32> to vector<16x64xbf16>
    %c0_9 = arith.constant 0 : index
    %c0_10 = arith.constant 0 : index
    %13 = vector.load %arg7[%c0_9, %c0_10] : memref<64x32xbf16, #tpu.memory_space<vmem>>, vector<64x32xbf16>
    %cst_11 = arith.constant dense<0.000000e+00> : vector<16x32xf32>
    %14 = tpu.matmul %12, %13, %cst_11 {dimension_numbers = #tpu.dot_dimension_numbers<[1], [0], [0], [1], [0, 0, 1, 1], [], []>} : vector<16x64xbf16>, vector<64x32xbf16>, vector<16x32xf32> -> vector<16x32xf32>
    %15 = arith.addf %11, %14 : vector<16x32xf32>
    %c0_12 = arith.constant 0 : index
    %c0_13 = arith.constant 0 : index
    %16 = vector.load %arg11[%c0_12, %c0_13] : memref<16x32xf32, #tpu.memory_space<vmem>>, vector<16x32xf32>
    tpu.vector_store %arg11[%c0_12, %c0_13], %15 {strides = array<i32>} : memref<16x32xf32, #tpu.memory_space<vmem>>, vector<16x32xf32>,
    %c0_i32_14 = arith.constant 0 : i32
    %17 = arith.cmpi eq, %arg1, %c0_i32_14 : i32
    %18 = arith.extui %17 : i1 to i32
    %c0_i32_15 = arith.constant 0 : i32
    %19 = arith.cmpi ne, %18, %c0_i32_15 : i32
    scf.if %19 {
      %c0_16 = arith.constant 0 : index
      %c0_17 = arith.constant 0 : index
      %20 = vector.load %arg2[%c0_16, %c0_17] : memref<16x32xf32, #tpu.memory_space<vmem>>, vector<16x32xf32>
      %c0_18 = arith.constant 0 : index
      %c0_19 = arith.constant 0 : index
      %21 = vector.load %arg11[%c0_18, %c0_19] : memref<16x32xf32, #tpu.memory_space<vmem>>, vector<16x32xf32>
      %22 = arith.addf %20, %21 : vector<16x32xf32>
      %c0_20 = arith.constant 0 : index
      %c0_21 = arith.constant 0 : index
      %23 = vector.load %arg8[%c0_20, %c0_21] : memref<1x32xf32, #tpu.memory_space<vmem>>, vector<1x32xf32>
      %24 = vector.broadcast %23 : vector<1x32xf32> to vector<16x32xf32>
      %25 = arith.addf %22, %24 : vector<16x32xf32>
      %c0_22 = arith.constant 0 : index
      %c0_23 = arith.constant 0 : index
      %26 = vector.load %arg9[%c0_22, %c0_23] : memref<16x32xf32, #tpu.memory_space<vmem>>, vector<16x32xf32>
      tpu.vector_store %arg9[%c0_22, %c0_23], %25 {strides = array<i32>} : memref<16x32xf32, #tpu.memory_space<vmem>>, vector<16x32xf32>,
    } else {
    }
    return
  }
  func.func @transform_0(%arg0: i32, %arg1: i32) -> (i32, i32) {
    %c0_i32 = arith.constant 0 : i32
    %c0_i32_0 = arith.constant 0 : i32
    return %arg0, %c0_i32 : i32, i32
  }
  func.func @transform_1(%arg0: i32, %arg1: i32) -> (i32, i32) {
    %c0_i32 = arith.constant 0 : i32
    %c0_i32_0 = arith.constant 0 : i32
    %c0_i32_1 = arith.constant 0 : i32
    return %c0_i32, %c0_i32_0 : i32, i32
  }
  func.func @transform_2(%arg0: i32, %arg1: i32) -> (i32, i32) {
    %c0_i32 = arith.constant 0 : i32
    %c0_i32_0 = arith.constant 0 : i32
    %c0_i32_1 = arith.constant 0 : i32
    return %c0_i32, %c0_i32_0 : i32, i32
  }
  func.func @transform_3(%arg0: i32, %arg1: i32) -> (i32, i32) {
    %c0_i32 = arith.constant 0 : i32
    %c0_i32_0 = arith.constant 0 : i32
    return %c0_i32, %arg1 : i32, i32
  }
  func.func @transform_4(%arg0: i32, %arg1: i32) -> (i32, i32) {
    %c0_i32 = arith.constant 0 : i32
    %c0_i32_0 = arith.constant 0 : i32
    return %c0_i32, %arg1 : i32, i32
  }
  func.func @transform_5(%arg0: i32, %arg1: i32) -> (i32, i32) {
    %c0_i32 = arith.constant 0 : i32
    %c0_i32_0 = arith.constant 0 : i32
    return %arg1, %c0_i32 : i32, i32
  }
  func.func @transform_6(%arg0: i32, %arg1: i32) -> (i32, i32) {
    %c0_i32 = arith.constant 0 : i32
    %c0_i32_0 = arith.constant 0 : i32
    %c0_i32_1 = arith.constant 0 : i32
    return %c0_i32, %c0_i32_0 : i32, i32
  }
  func.func @transform_7(%arg0: i32, %arg1: i32) -> (i32, i32) {
    %c0_i32 = arith.constant 0 : i32
    %c0_i32_0 = arith.constant 0 : i32
    return %arg0, %c0_i32 : i32, i32
  }
}

module attributes {stable_mosaic.version = 11 : i64} {
  func.func @kernel(%arg0: i32, %arg1: i32, %arg2: i32, %arg3: memref<1x8x32xbf16, #tpu.memory_space<vmem>>, %arg4: memref<1x8x32xbf16, #tpu.memory_space<vmem>>, %arg5: memref<1x8x32xbf16, #tpu.memory_space<vmem>>, %arg6: memref<1x8x32xf32, #tpu.memory_space<vmem>>, %arg7: memref<32x32xbf16, #tpu.memory_space<vmem>>, %arg8: memref<1x32xf32, #tpu.memory_space<vmem>>, %arg9: memref<1x8x32xf32, #tpu.memory_space<vmem>>, %arg10: memref<8x4xf32, #tpu.memory_space<vmem>>, %arg11: memref<8x4xf32, #tpu.memory_space<vmem>>, %arg12: memref<8x32xf32, #tpu.memory_space<vmem>>) attributes {dimension_semantics = [#tpu.dimension_semantics<parallel>, #tpu.dimension_semantics<parallel>, #tpu.dimension_semantics<arbitrary>], iteration_bounds = array<i64: 2, 1, 1>, scalar_prefetch = 0 : i64, scratch_operands = 3 : i64, tpu.core_type = #tpu.core_type<tc>, window_params = [{transform_indices = @transform_0, window_bounds = array<i64: 1, 8, 32>}, {transform_indices = @transform_1, window_bounds = array<i64: 1, 8, 32>}, {transform_indices = @transform_2, window_bounds = array<i64: 1, 8, 32>}, {transform_indices = @transform_3, window_bounds = array<i64: 1, 8, 32>}, {pipeline_mode = #tpu.pipeline_mode<synchronous>, transform_indices = @transform_4, window_bounds = array<i64: 32, 32>}, {pipeline_mode = #tpu.pipeline_mode<synchronous>, transform_indices = @transform_5, window_bounds = array<i64: 1, 32>}, {transform_indices = @transform_6, window_bounds = array<i64: 1, 8, 32>}]} {
    %c0_i32 = arith.constant 0 : i32
    %0 = arith.cmpi eq, %arg2, %c0_i32 : i32
    %1 = arith.extui %0 : i1 to i32
    %c0_i32_0 = arith.constant 0 : i32
    %2 = arith.cmpi ne, %1, %c0_i32_0 : i32
    scf.if %2 {
      %cst = arith.constant -1.000000e+30 : f32
      %9 = vector.broadcast %cst : f32 to vector<8x4xf32>
      %c0 = arith.constant 0 : index
      %c0_3 = arith.constant 0 : index
      %10 = vector.load %arg10[%c0, %c0_3] : memref<8x4xf32, #tpu.memory_space<vmem>>, vector<8x4xf32>
      tpu.vector_store %arg10[%c0, %c0_3], %9 {strides = array<i32>} : memref<8x4xf32, #tpu.memory_space<vmem>>, vector<8x4xf32>,
      %cst_4 = arith.constant 0.000000e+00 : f32
      %11 = vector.broadcast %cst_4 : f32 to vector<8x4xf32>
      %c0_5 = arith.constant 0 : index
      %c0_6 = arith.constant 0 : index
      %12 = vector.load %arg11[%c0_5, %c0_6] : memref<8x4xf32, #tpu.memory_space<vmem>>, vector<8x4xf32>
      tpu.vector_store %arg11[%c0_5, %c0_6], %11 {strides = array<i32>} : memref<8x4xf32, #tpu.memory_space<vmem>>, vector<8x4xf32>,
      %cst_7 = arith.constant 0.000000e+00 : f32
      %13 = vector.broadcast %cst_7 : f32 to vector<8x32xf32>
      %c0_8 = arith.constant 0 : index
      %c0_9 = arith.constant 0 : index
      %14 = vector.load %arg12[%c0_8, %c0_9] : memref<8x32xf32, #tpu.memory_space<vmem>>, vector<8x32xf32>
      tpu.vector_store %arg12[%c0_8, %c0_9], %13 {strides = array<i32>} : memref<8x32xf32, #tpu.memory_space<vmem>>, vector<8x32xf32>,
    } else {
    }
    %3 = arith.cmpi slt, %arg2, %arg1 : i32
    %4 = arith.extui %3 : i1 to i32
    %c0_i32_1 = arith.constant 0 : i32
    %5 = arith.cmpi ne, %4, %c0_i32_1 : i32
    scf.if %5 {
      %c0 = arith.constant 0 : index
      %c0_3 = arith.constant 0 : index
      %c0_4 = arith.constant 0 : index
      %9 = vector.load %arg3[%c0, %c0_3, %c0_4] : memref<1x8x32xbf16, #tpu.memory_space<vmem>>, vector<1x8x32xbf16>
      %10 = vector.shape_cast %9 : vector<1x8x32xbf16> to vector<8x32xbf16>
      %c0_5 = arith.constant 0 : index
      %c0_6 = arith.constant 0 : index
      %c0_7 = arith.constant 0 : index
      %11 = vector.load %arg4[%c0_5, %c0_6, %c0_7] : memref<1x8x32xbf16, #tpu.memory_space<vmem>>, vector<1x8x32xbf16>
      %12 = vector.shape_cast %11 : vector<1x8x32xbf16> to vector<8x32xbf16>
      %c0_8 = arith.constant 0 : index
      %c0_9 = arith.constant 0 : index
      %c0_10 = arith.constant 0 : index
      %13 = vector.load %arg5[%c0_8, %c0_9, %c0_10] : memref<1x8x32xbf16, #tpu.memory_space<vmem>>, vector<1x8x32xbf16>
      %14 = vector.shape_cast %13 : vector<1x8x32xbf16> to vector<8x32xbf16>
      %15 = vector.extract_strided_slice %10 {offsets = [0, 0], sizes = [8, 8], strides = [1, 1]} : vector<8x32xbf16> to vector<8x8xbf16>
      %16 = vector.extract_strided_slice %12 {offsets = [0, 0], sizes = [8, 8], strides = [1, 1]} : vector<8x32xbf16> to vector<8x8xbf16>
      %cst = arith.constant dense<0.000000e+00> : vector<8x8xf32>
      %17 = tpu.matmul %15, %16, %cst {dimension_numbers = #tpu.dot_dimension_numbers<[1], [1], [0], [0], [0, 0, 1, 0], [], []>} : vector<8x8xbf16>, vector<8x8xbf16>, vector<8x8xf32> -> vector<8x8xf32>
      %c0_11 = arith.constant 0 : index
      %c0_12 = arith.constant 0 : index
      %18 = vector.load %arg10[%c0_11, %c0_12] : memref<8x4xf32, #tpu.memory_space<vmem>>, vector<8x1xf32>
      %cst_13 = arith.constant dense<0xFF800000> : vector<8xf32>
      %19 = vector.multi_reduction <maximumf>, %17, %cst_13 [1] : vector<8x8xf32> to vector<8xf32>
      %20 = vector.shape_cast %19 : vector<8xf32> to vector<8x1xf32>
      %21 = arith.maximumf %18, %20 : vector<8x1xf32>
      %22 = arith.subf %18, %21 : vector<8x1xf32>
      %23 = math.exp %22 : vector<8x1xf32>
      %24 = vector.broadcast %21 : vector<8x1xf32> to vector<8x8xf32>
      %25 = arith.subf %17, %24 : vector<8x8xf32>
      %26 = math.exp %25 : vector<8x8xf32>
      %c0_14 = arith.constant 0 : index
      %c0_15 = arith.constant 0 : index
      %27 = vector.load %arg11[%c0_14, %c0_15] : memref<8x4xf32, #tpu.memory_space<vmem>>, vector<8x1xf32>
      %28 = arith.mulf %23, %27 : vector<8x1xf32>
      %cst_16 = arith.constant dense<0.000000e+00> : vector<8xf32>
      %29 = vector.multi_reduction <add>, %26, %cst_16 [1] : vector<8x8xf32> to vector<8xf32>
      %30 = vector.shape_cast %29 : vector<8xf32> to vector<8x1xf32>
      %31 = arith.addf %28, %30 : vector<8x1xf32>
      %c0_17 = arith.constant 0 : index
      %c0_18 = arith.constant 0 : index
      %32 = vector.load %arg11[%c0_17, %c0_18] : memref<8x4xf32, #tpu.memory_space<vmem>>, vector<8x1xf32>
      tpu.vector_store %arg11[%c0_17, %c0_18], %31 {strides = array<i32>} : memref<8x4xf32, #tpu.memory_space<vmem>>, vector<8x1xf32>,
      %c0_19 = arith.constant 0 : index
      %c0_20 = arith.constant 0 : index
      %33 = vector.load %arg12[%c0_19, %c0_20] : memref<8x32xf32, #tpu.memory_space<vmem>>, vector<8x8xf32>
      %34 = vector.broadcast %23 : vector<8x1xf32> to vector<8x8xf32>
      %35 = arith.mulf %34, %33 : vector<8x8xf32>
      %36 = arith.truncf %26 : vector<8x8xf32> to vector<8x8xbf16>
      %37 = vector.extract_strided_slice %14 {offsets = [0, 0], sizes = [8, 8], strides = [1, 1]} : vector<8x32xbf16> to vector<8x8xbf16>
      %cst_21 = arith.constant dense<0.000000e+00> : vector<8x8xf32>
      %38 = tpu.matmul %36, %37, %cst_21 {dimension_numbers = #tpu.dot_dimension_numbers<[1], [0], [0], [1], [0, 0, 1, 1], [], []>} : vector<8x8xbf16>, vector<8x8xbf16>, vector<8x8xf32> -> vector<8x8xf32>
      %39 = arith.addf %35, %38 : vector<8x8xf32>
      %c0_22 = arith.constant 0 : index
      %c0_23 = arith.constant 0 : index
      %40 = vector.load %arg12[%c0_22, %c0_23] : memref<8x32xf32, #tpu.memory_space<vmem>>, vector<8x8xf32>
      tpu.vector_store %arg12[%c0_22, %c0_23], %39 {strides = array<i32>} : memref<8x32xf32, #tpu.memory_space<vmem>>, vector<8x8xf32>,
      %c0_24 = arith.constant 0 : index
      %c0_25 = arith.constant 0 : index
      %41 = vector.load %arg10[%c0_24, %c0_25] : memref<8x4xf32, #tpu.memory_space<vmem>>, vector<8x1xf32>
      tpu.vector_store %arg10[%c0_24, %c0_25], %21 {strides = array<i32>} : memref<8x4xf32, #tpu.memory_space<vmem>>, vector<8x1xf32>,
      %42 = vector.extract_strided_slice %10 {offsets = [0, 8], sizes = [8, 8], strides = [1, 1]} : vector<8x32xbf16> to vector<8x8xbf16>
      %43 = vector.extract_strided_slice %12 {offsets = [0, 8], sizes = [8, 8], strides = [1, 1]} : vector<8x32xbf16> to vector<8x8xbf16>
      %cst_26 = arith.constant dense<0.000000e+00> : vector<8x8xf32>
      %44 = tpu.matmul %42, %43, %cst_26 {dimension_numbers = #tpu.dot_dimension_numbers<[1], [1], [0], [0], [0, 0, 1, 0], [], []>} : vector<8x8xbf16>, vector<8x8xbf16>, vector<8x8xf32> -> vector<8x8xf32>
      %c0_27 = arith.constant 0 : index
      %c1 = arith.constant 1 : index
      %45 = vector.load %arg10[%c0_27, %c1] : memref<8x4xf32, #tpu.memory_space<vmem>>, vector<8x1xf32>
      %cst_28 = arith.constant dense<0xFF800000> : vector<8xf32>
      %46 = vector.multi_reduction <maximumf>, %44, %cst_28 [1] : vector<8x8xf32> to vector<8xf32>
      %47 = vector.shape_cast %46 : vector<8xf32> to vector<8x1xf32>
      %48 = arith.maximumf %45, %47 : vector<8x1xf32>
      %49 = arith.subf %45, %48 : vector<8x1xf32>
      %50 = math.exp %49 : vector<8x1xf32>
      %51 = vector.broadcast %48 : vector<8x1xf32> to vector<8x8xf32>
      %52 = arith.subf %44, %51 : vector<8x8xf32>
      %53 = math.exp %52 : vector<8x8xf32>
      %c0_29 = arith.constant 0 : index
      %c1_30 = arith.constant 1 : index
      %54 = vector.load %arg11[%c0_29, %c1_30] : memref<8x4xf32, #tpu.memory_space<vmem>>, vector<8x1xf32>
      %55 = arith.mulf %50, %54 : vector<8x1xf32>
      %cst_31 = arith.constant dense<0.000000e+00> : vector<8xf32>
      %56 = vector.multi_reduction <add>, %53, %cst_31 [1] : vector<8x8xf32> to vector<8xf32>
      %57 = vector.shape_cast %56 : vector<8xf32> to vector<8x1xf32>
      %58 = arith.addf %55, %57 : vector<8x1xf32>
      %c0_32 = arith.constant 0 : index
      %c1_33 = arith.constant 1 : index
      %59 = vector.load %arg11[%c0_32, %c1_33] : memref<8x4xf32, #tpu.memory_space<vmem>>, vector<8x1xf32>
      tpu.vector_store %arg11[%c0_32, %c1_33], %58 {strides = array<i32>} : memref<8x4xf32, #tpu.memory_space<vmem>>, vector<8x1xf32>,
      %c0_34 = arith.constant 0 : index
      %c8 = arith.constant 8 : index
      %60 = vector.load %arg12[%c0_34, %c8] : memref<8x32xf32, #tpu.memory_space<vmem>>, vector<8x8xf32>
      %61 = vector.broadcast %50 : vector<8x1xf32> to vector<8x8xf32>
      %62 = arith.mulf %61, %60 : vector<8x8xf32>
      %63 = arith.truncf %53 : vector<8x8xf32> to vector<8x8xbf16>
      %64 = vector.extract_strided_slice %14 {offsets = [0, 8], sizes = [8, 8], strides = [1, 1]} : vector<8x32xbf16> to vector<8x8xbf16>
      %cst_35 = arith.constant dense<0.000000e+00> : vector<8x8xf32>
      %65 = tpu.matmul %63, %64, %cst_35 {dimension_numbers = #tpu.dot_dimension_numbers<[1], [0], [0], [1], [0, 0, 1, 1], [], []>} : vector<8x8xbf16>, vector<8x8xbf16>, vector<8x8xf32> -> vector<8x8xf32>
      %66 = arith.addf %62, %65 : vector<8x8xf32>
      %c0_36 = arith.constant 0 : index
      %c8_37 = arith.constant 8 : index
      %67 = vector.load %arg12[%c0_36, %c8_37] : memref<8x32xf32, #tpu.memory_space<vmem>>, vector<8x8xf32>
      tpu.vector_store %arg12[%c0_36, %c8_37], %66 {strides = array<i32>} : memref<8x32xf32, #tpu.memory_space<vmem>>, vector<8x8xf32>,
      %c0_38 = arith.constant 0 : index
      %c1_39 = arith.constant 1 : index
      %68 = vector.load %arg10[%c0_38, %c1_39] : memref<8x4xf32, #tpu.memory_space<vmem>>, vector<8x1xf32>
      tpu.vector_store %arg10[%c0_38, %c1_39], %48 {strides = array<i32>} : memref<8x4xf32, #tpu.memory_space<vmem>>, vector<8x1xf32>,
      %69 = vector.extract_strided_slice %10 {offsets = [0, 16], sizes = [8, 8], strides = [1, 1]} : vector<8x32xbf16> to vector<8x8xbf16>
      %70 = vector.extract_strided_slice %12 {offsets = [0, 16], sizes = [8, 8], strides = [1, 1]} : vector<8x32xbf16> to vector<8x8xbf16>
      %cst_40 = arith.constant dense<0.000000e+00> : vector<8x8xf32>
      %71 = tpu.matmul %69, %70, %cst_40 {dimension_numbers = #tpu.dot_dimension_numbers<[1], [1], [0], [0], [0, 0, 1, 0], [], []>} : vector<8x8xbf16>, vector<8x8xbf16>, vector<8x8xf32> -> vector<8x8xf32>
      %c0_41 = arith.constant 0 : index
      %c2 = arith.constant 2 : index
      %72 = vector.load %arg10[%c0_41, %c2] : memref<8x4xf32, #tpu.memory_space<vmem>>, vector<8x1xf32>
      %cst_42 = arith.constant dense<0xFF800000> : vector<8xf32>
      %73 = vector.multi_reduction <maximumf>, %71, %cst_42 [1] : vector<8x8xf32> to vector<8xf32>
      %74 = vector.shape_cast %73 : vector<8xf32> to vector<8x1xf32>
      %75 = arith.maximumf %72, %74 : vector<8x1xf32>
      %76 = arith.subf %72, %75 : vector<8x1xf32>
      %77 = math.exp %76 : vector<8x1xf32>
      %78 = vector.broadcast %75 : vector<8x1xf32> to vector<8x8xf32>
      %79 = arith.subf %71, %78 : vector<8x8xf32>
      %80 = math.exp %79 : vector<8x8xf32>
      %c0_43 = arith.constant 0 : index
      %c2_44 = arith.constant 2 : index
      %81 = vector.load %arg11[%c0_43, %c2_44] : memref<8x4xf32, #tpu.memory_space<vmem>>, vector<8x1xf32>
      %82 = arith.mulf %77, %81 : vector<8x1xf32>
      %cst_45 = arith.constant dense<0.000000e+00> : vector<8xf32>
      %83 = vector.multi_reduction <add>, %80, %cst_45 [1] : vector<8x8xf32> to vector<8xf32>
      %84 = vector.shape_cast %83 : vector<8xf32> to vector<8x1xf32>
      %85 = arith.addf %82, %84 : vector<8x1xf32>
      %c0_46 = arith.constant 0 : index
      %c2_47 = arith.constant 2 : index
      %86 = vector.load %arg11[%c0_46, %c2_47] : memref<8x4xf32, #tpu.memory_space<vmem>>, vector<8x1xf32>
      tpu.vector_store %arg11[%c0_46, %c2_47], %85 {strides = array<i32>} : memref<8x4xf32, #tpu.memory_space<vmem>>, vector<8x1xf32>,
      %c0_48 = arith.constant 0 : index
      %c16 = arith.constant 16 : index
      %87 = vector.load %arg12[%c0_48, %c16] : memref<8x32xf32, #tpu.memory_space<vmem>>, vector<8x8xf32>
      %88 = vector.broadcast %77 : vector<8x1xf32> to vector<8x8xf32>
      %89 = arith.mulf %88, %87 : vector<8x8xf32>
      %90 = arith.truncf %80 : vector<8x8xf32> to vector<8x8xbf16>
      %91 = vector.extract_strided_slice %14 {offsets = [0, 16], sizes = [8, 8], strides = [1, 1]} : vector<8x32xbf16> to vector<8x8xbf16>
      %cst_49 = arith.constant dense<0.000000e+00> : vector<8x8xf32>
      %92 = tpu.matmul %90, %91, %cst_49 {dimension_numbers = #tpu.dot_dimension_numbers<[1], [0], [0], [1], [0, 0, 1, 1], [], []>} : vector<8x8xbf16>, vector<8x8xbf16>, vector<8x8xf32> -> vector<8x8xf32>
      %93 = arith.addf %89, %92 : vector<8x8xf32>
      %c0_50 = arith.constant 0 : index
      %c16_51 = arith.constant 16 : index
      %94 = vector.load %arg12[%c0_50, %c16_51] : memref<8x32xf32, #tpu.memory_space<vmem>>, vector<8x8xf32>
      tpu.vector_store %arg12[%c0_50, %c16_51], %93 {strides = array<i32>} : memref<8x32xf32, #tpu.memory_space<vmem>>, vector<8x8xf32>,
      %c0_52 = arith.constant 0 : index
      %c2_53 = arith.constant 2 : index
      %95 = vector.load %arg10[%c0_52, %c2_53] : memref<8x4xf32, #tpu.memory_space<vmem>>, vector<8x1xf32>
      tpu.vector_store %arg10[%c0_52, %c2_53], %75 {strides = array<i32>} : memref<8x4xf32, #tpu.memory_space<vmem>>, vector<8x1xf32>,
      %96 = vector.extract_strided_slice %10 {offsets = [0, 24], sizes = [8, 8], strides = [1, 1]} : vector<8x32xbf16> to vector<8x8xbf16>
      %97 = vector.extract_strided_slice %12 {offsets = [0, 24], sizes = [8, 8], strides = [1, 1]} : vector<8x32xbf16> to vector<8x8xbf16>
      %cst_54 = arith.constant dense<0.000000e+00> : vector<8x8xf32>
      %98 = tpu.matmul %96, %97, %cst_54 {dimension_numbers = #tpu.dot_dimension_numbers<[1], [1], [0], [0], [0, 0, 1, 0], [], []>} : vector<8x8xbf16>, vector<8x8xbf16>, vector<8x8xf32> -> vector<8x8xf32>
      %c0_55 = arith.constant 0 : index
      %c3 = arith.constant 3 : index
      %99 = vector.load %arg10[%c0_55, %c3] : memref<8x4xf32, #tpu.memory_space<vmem>>, vector<8x1xf32>
      %cst_56 = arith.constant dense<0xFF800000> : vector<8xf32>
      %100 = vector.multi_reduction <maximumf>, %98, %cst_56 [1] : vector<8x8xf32> to vector<8xf32>
      %101 = vector.shape_cast %100 : vector<8xf32> to vector<8x1xf32>
      %102 = arith.maximumf %99, %101 : vector<8x1xf32>
      %103 = arith.subf %99, %102 : vector<8x1xf32>
      %104 = math.exp %103 : vector<8x1xf32>
      %105 = vector.broadcast %102 : vector<8x1xf32> to vector<8x8xf32>
      %106 = arith.subf %98, %105 : vector<8x8xf32>
      %107 = math.exp %106 : vector<8x8xf32>
      %c0_57 = arith.constant 0 : index
      %c3_58 = arith.constant 3 : index
      %108 = vector.load %arg11[%c0_57, %c3_58] : memref<8x4xf32, #tpu.memory_space<vmem>>, vector<8x1xf32>
      %109 = arith.mulf %104, %108 : vector<8x1xf32>
      %cst_59 = arith.constant dense<0.000000e+00> : vector<8xf32>
      %110 = vector.multi_reduction <add>, %107, %cst_59 [1] : vector<8x8xf32> to vector<8xf32>
      %111 = vector.shape_cast %110 : vector<8xf32> to vector<8x1xf32>
      %112 = arith.addf %109, %111 : vector<8x1xf32>
      %c0_60 = arith.constant 0 : index
      %c3_61 = arith.constant 3 : index
      %113 = vector.load %arg11[%c0_60, %c3_61] : memref<8x4xf32, #tpu.memory_space<vmem>>, vector<8x1xf32>
      tpu.vector_store %arg11[%c0_60, %c3_61], %112 {strides = array<i32>} : memref<8x4xf32, #tpu.memory_space<vmem>>, vector<8x1xf32>,
      %c0_62 = arith.constant 0 : index
      %c24 = arith.constant 24 : index
      %114 = vector.load %arg12[%c0_62, %c24] : memref<8x32xf32, #tpu.memory_space<vmem>>, vector<8x8xf32>
      %115 = vector.broadcast %104 : vector<8x1xf32> to vector<8x8xf32>
      %116 = arith.mulf %115, %114 : vector<8x8xf32>
      %117 = arith.truncf %107 : vector<8x8xf32> to vector<8x8xbf16>
      %118 = vector.extract_strided_slice %14 {offsets = [0, 24], sizes = [8, 8], strides = [1, 1]} : vector<8x32xbf16> to vector<8x8xbf16>
      %cst_63 = arith.constant dense<0.000000e+00> : vector<8x8xf32>
      %119 = tpu.matmul %117, %118, %cst_63 {dimension_numbers = #tpu.dot_dimension_numbers<[1], [0], [0], [1], [0, 0, 1, 1], [], []>} : vector<8x8xbf16>, vector<8x8xbf16>, vector<8x8xf32> -> vector<8x8xf32>
      %120 = arith.addf %116, %119 : vector<8x8xf32>
      %c0_64 = arith.constant 0 : index
      %c24_65 = arith.constant 24 : index
      %121 = vector.load %arg12[%c0_64, %c24_65] : memref<8x32xf32, #tpu.memory_space<vmem>>, vector<8x8xf32>
      tpu.vector_store %arg12[%c0_64, %c24_65], %120 {strides = array<i32>} : memref<8x32xf32, #tpu.memory_space<vmem>>, vector<8x8xf32>,
      %c0_66 = arith.constant 0 : index
      %c3_67 = arith.constant 3 : index
      %122 = vector.load %arg10[%c0_66, %c3_67] : memref<8x4xf32, #tpu.memory_space<vmem>>, vector<8x1xf32>
      tpu.vector_store %arg10[%c0_66, %c3_67], %102 {strides = array<i32>} : memref<8x4xf32, #tpu.memory_space<vmem>>, vector<8x1xf32>,
    } else {
    }
    %6 = arith.cmpi eq, %arg2, %arg1 : i32
    %7 = arith.extui %6 : i1 to i32
    %c0_i32_2 = arith.constant 0 : i32
    %8 = arith.cmpi ne, %7, %c0_i32_2 : i32
    scf.if %8 {
      %c0 = arith.constant 0 : index
      %c0_3 = arith.constant 0 : index
      %c0_4 = arith.constant 0 : index
      %9 = vector.load %arg3[%c0, %c0_3, %c0_4] : memref<1x8x32xbf16, #tpu.memory_space<vmem>>, vector<1x8x32xbf16>
      %10 = vector.shape_cast %9 : vector<1x8x32xbf16> to vector<8x32xbf16>
      %c0_5 = arith.constant 0 : index
      %c0_6 = arith.constant 0 : index
      %c0_7 = arith.constant 0 : index
      %11 = vector.load %arg4[%c0_5, %c0_6, %c0_7] : memref<1x8x32xbf16, #tpu.memory_space<vmem>>, vector<1x8x32xbf16>
      %12 = vector.shape_cast %11 : vector<1x8x32xbf16> to vector<8x32xbf16>
      %c0_8 = arith.constant 0 : index
      %c0_9 = arith.constant 0 : index
      %c0_10 = arith.constant 0 : index
      %13 = vector.load %arg5[%c0_8, %c0_9, %c0_10] : memref<1x8x32xbf16, #tpu.memory_space<vmem>>, vector<1x8x32xbf16>
      %14 = vector.shape_cast %13 : vector<1x8x32xbf16> to vector<8x32xbf16>
      %15 = tpu.iota {dimensions = array<i32: 0>} : vector<8x8xi32>
      %16 = tpu.iota {dimensions = array<i32: 1>} : vector<8x8xi32>
      %17 = arith.cmpi sle, %16, %15 : vector<8x8xi32>
      %18 = vector.extract_strided_slice %10 {offsets = [0, 0], sizes = [8, 8], strides = [1, 1]} : vector<8x32xbf16> to vector<8x8xbf16>
      %19 = vector.extract_strided_slice %12 {offsets = [0, 0], sizes = [8, 8], strides = [1, 1]} : vector<8x32xbf16> to vector<8x8xbf16>
      %cst = arith.constant dense<0.000000e+00> : vector<8x8xf32>
      %20 = tpu.matmul %18, %19, %cst {dimension_numbers = #tpu.dot_dimension_numbers<[1], [1], [0], [0], [0, 0, 1, 0], [], []>} : vector<8x8xbf16>, vector<8x8xbf16>, vector<8x8xf32> -> vector<8x8xf32>
      %cst_11 = arith.constant -1.000000e+30 : f32
      %21 = vector.broadcast %cst_11 : f32 to vector<8x8xf32>
      %22 = arith.select %17, %20, %21 : vector<8x8xi1>, vector<8x8xf32>
      %c0_12 = arith.constant 0 : index
      %c0_13 = arith.constant 0 : index
      %23 = vector.load %arg10[%c0_12, %c0_13] : memref<8x4xf32, #tpu.memory_space<vmem>>, vector<8x1xf32>
      %cst_14 = arith.constant dense<0xFF800000> : vector<8xf32>
      %24 = vector.multi_reduction <maximumf>, %22, %cst_14 [1] : vector<8x8xf32> to vector<8xf32>
      %25 = vector.shape_cast %24 : vector<8xf32> to vector<8x1xf32>
      %26 = arith.maximumf %23, %25 : vector<8x1xf32>
      %27 = arith.subf %23, %26 : vector<8x1xf32>
      %28 = math.exp %27 : vector<8x1xf32>
      %29 = vector.broadcast %26 : vector<8x1xf32> to vector<8x8xf32>
      %30 = arith.subf %22, %29 : vector<8x8xf32>
      %31 = math.exp %30 : vector<8x8xf32>
      %c0_15 = arith.constant 0 : index
      %c0_16 = arith.constant 0 : index
      %32 = vector.load %arg11[%c0_15, %c0_16] : memref<8x4xf32, #tpu.memory_space<vmem>>, vector<8x1xf32>
      %33 = arith.mulf %28, %32 : vector<8x1xf32>
      %cst_17 = arith.constant dense<0.000000e+00> : vector<8xf32>
      %34 = vector.multi_reduction <add>, %31, %cst_17 [1] : vector<8x8xf32> to vector<8xf32>
      %35 = vector.shape_cast %34 : vector<8xf32> to vector<8x1xf32>
      %36 = arith.addf %33, %35 : vector<8x1xf32>
      %c0_18 = arith.constant 0 : index
      %c0_19 = arith.constant 0 : index
      %37 = vector.load %arg11[%c0_18, %c0_19] : memref<8x4xf32, #tpu.memory_space<vmem>>, vector<8x1xf32>
      tpu.vector_store %arg11[%c0_18, %c0_19], %36 {strides = array<i32>} : memref<8x4xf32, #tpu.memory_space<vmem>>, vector<8x1xf32>,
      %c0_20 = arith.constant 0 : index
      %c0_21 = arith.constant 0 : index
      %38 = vector.load %arg12[%c0_20, %c0_21] : memref<8x32xf32, #tpu.memory_space<vmem>>, vector<8x8xf32>
      %39 = vector.broadcast %28 : vector<8x1xf32> to vector<8x8xf32>
      %40 = arith.mulf %39, %38 : vector<8x8xf32>
      %41 = arith.truncf %31 : vector<8x8xf32> to vector<8x8xbf16>
      %42 = vector.extract_strided_slice %14 {offsets = [0, 0], sizes = [8, 8], strides = [1, 1]} : vector<8x32xbf16> to vector<8x8xbf16>
      %cst_22 = arith.constant dense<0.000000e+00> : vector<8x8xf32>
      %43 = tpu.matmul %41, %42, %cst_22 {dimension_numbers = #tpu.dot_dimension_numbers<[1], [0], [0], [1], [0, 0, 1, 1], [], []>} : vector<8x8xbf16>, vector<8x8xbf16>, vector<8x8xf32> -> vector<8x8xf32>
      %44 = arith.addf %40, %43 : vector<8x8xf32>
      %c0_23 = arith.constant 0 : index
      %c0_24 = arith.constant 0 : index
      %45 = vector.load %arg12[%c0_23, %c0_24] : memref<8x32xf32, #tpu.memory_space<vmem>>, vector<8x8xf32>
      tpu.vector_store %arg12[%c0_23, %c0_24], %44 {strides = array<i32>} : memref<8x32xf32, #tpu.memory_space<vmem>>, vector<8x8xf32>,
      %c0_25 = arith.constant 0 : index
      %c0_26 = arith.constant 0 : index
      %46 = vector.load %arg10[%c0_25, %c0_26] : memref<8x4xf32, #tpu.memory_space<vmem>>, vector<8x1xf32>
      tpu.vector_store %arg10[%c0_25, %c0_26], %26 {strides = array<i32>} : memref<8x4xf32, #tpu.memory_space<vmem>>, vector<8x1xf32>,
      %47 = vector.extract_strided_slice %10 {offsets = [0, 8], sizes = [8, 8], strides = [1, 1]} : vector<8x32xbf16> to vector<8x8xbf16>
      %48 = vector.extract_strided_slice %12 {offsets = [0, 8], sizes = [8, 8], strides = [1, 1]} : vector<8x32xbf16> to vector<8x8xbf16>
      %cst_27 = arith.constant dense<0.000000e+00> : vector<8x8xf32>
      %49 = tpu.matmul %47, %48, %cst_27 {dimension_numbers = #tpu.dot_dimension_numbers<[1], [1], [0], [0], [0, 0, 1, 0], [], []>} : vector<8x8xbf16>, vector<8x8xbf16>, vector<8x8xf32> -> vector<8x8xf32>
      %cst_28 = arith.constant -1.000000e+30 : f32
      %50 = vector.broadcast %cst_28 : f32 to vector<8x8xf32>
      %51 = arith.select %17, %49, %50 : vector<8x8xi1>, vector<8x8xf32>
      %c0_29 = arith.constant 0 : index
      %c1 = arith.constant 1 : index
      %52 = vector.load %arg10[%c0_29, %c1] : memref<8x4xf32, #tpu.memory_space<vmem>>, vector<8x1xf32>
      %cst_30 = arith.constant dense<0xFF800000> : vector<8xf32>
      %53 = vector.multi_reduction <maximumf>, %51, %cst_30 [1] : vector<8x8xf32> to vector<8xf32>
      %54 = vector.shape_cast %53 : vector<8xf32> to vector<8x1xf32>
      %55 = arith.maximumf %52, %54 : vector<8x1xf32>
      %56 = arith.subf %52, %55 : vector<8x1xf32>
      %57 = math.exp %56 : vector<8x1xf32>
      %58 = vector.broadcast %55 : vector<8x1xf32> to vector<8x8xf32>
      %59 = arith.subf %51, %58 : vector<8x8xf32>
      %60 = math.exp %59 : vector<8x8xf32>
      %c0_31 = arith.constant 0 : index
      %c1_32 = arith.constant 1 : index
      %61 = vector.load %arg11[%c0_31, %c1_32] : memref<8x4xf32, #tpu.memory_space<vmem>>, vector<8x1xf32>
      %62 = arith.mulf %57, %61 : vector<8x1xf32>
      %cst_33 = arith.constant dense<0.000000e+00> : vector<8xf32>
      %63 = vector.multi_reduction <add>, %60, %cst_33 [1] : vector<8x8xf32> to vector<8xf32>
      %64 = vector.shape_cast %63 : vector<8xf32> to vector<8x1xf32>
      %65 = arith.addf %62, %64 : vector<8x1xf32>
      %c0_34 = arith.constant 0 : index
      %c1_35 = arith.constant 1 : index
      %66 = vector.load %arg11[%c0_34, %c1_35] : memref<8x4xf32, #tpu.memory_space<vmem>>, vector<8x1xf32>
      tpu.vector_store %arg11[%c0_34, %c1_35], %65 {strides = array<i32>} : memref<8x4xf32, #tpu.memory_space<vmem>>, vector<8x1xf32>,
      %c0_36 = arith.constant 0 : index
      %c8 = arith.constant 8 : index
      %67 = vector.load %arg12[%c0_36, %c8] : memref<8x32xf32, #tpu.memory_space<vmem>>, vector<8x8xf32>
      %68 = vector.broadcast %57 : vector<8x1xf32> to vector<8x8xf32>
      %69 = arith.mulf %68, %67 : vector<8x8xf32>
      %70 = arith.truncf %60 : vector<8x8xf32> to vector<8x8xbf16>
      %71 = vector.extract_strided_slice %14 {offsets = [0, 8], sizes = [8, 8], strides = [1, 1]} : vector<8x32xbf16> to vector<8x8xbf16>
      %cst_37 = arith.constant dense<0.000000e+00> : vector<8x8xf32>
      %72 = tpu.matmul %70, %71, %cst_37 {dimension_numbers = #tpu.dot_dimension_numbers<[1], [0], [0], [1], [0, 0, 1, 1], [], []>} : vector<8x8xbf16>, vector<8x8xbf16>, vector<8x8xf32> -> vector<8x8xf32>
      %73 = arith.addf %69, %72 : vector<8x8xf32>
      %c0_38 = arith.constant 0 : index
      %c8_39 = arith.constant 8 : index
      %74 = vector.load %arg12[%c0_38, %c8_39] : memref<8x32xf32, #tpu.memory_space<vmem>>, vector<8x8xf32>
      tpu.vector_store %arg12[%c0_38, %c8_39], %73 {strides = array<i32>} : memref<8x32xf32, #tpu.memory_space<vmem>>, vector<8x8xf32>,
      %c0_40 = arith.constant 0 : index
      %c1_41 = arith.constant 1 : index
      %75 = vector.load %arg10[%c0_40, %c1_41] : memref<8x4xf32, #tpu.memory_space<vmem>>, vector<8x1xf32>
      tpu.vector_store %arg10[%c0_40, %c1_41], %55 {strides = array<i32>} : memref<8x4xf32, #tpu.memory_space<vmem>>, vector<8x1xf32>,
      %76 = vector.extract_strided_slice %10 {offsets = [0, 16], sizes = [8, 8], strides = [1, 1]} : vector<8x32xbf16> to vector<8x8xbf16>
      %77 = vector.extract_strided_slice %12 {offsets = [0, 16], sizes = [8, 8], strides = [1, 1]} : vector<8x32xbf16> to vector<8x8xbf16>
      %cst_42 = arith.constant dense<0.000000e+00> : vector<8x8xf32>
      %78 = tpu.matmul %76, %77, %cst_42 {dimension_numbers = #tpu.dot_dimension_numbers<[1], [1], [0], [0], [0, 0, 1, 0], [], []>} : vector<8x8xbf16>, vector<8x8xbf16>, vector<8x8xf32> -> vector<8x8xf32>
      %cst_43 = arith.constant -1.000000e+30 : f32
      %79 = vector.broadcast %cst_43 : f32 to vector<8x8xf32>
      %80 = arith.select %17, %78, %79 : vector<8x8xi1>, vector<8x8xf32>
      %c0_44 = arith.constant 0 : index
      %c2 = arith.constant 2 : index
      %81 = vector.load %arg10[%c0_44, %c2] : memref<8x4xf32, #tpu.memory_space<vmem>>, vector<8x1xf32>
      %cst_45 = arith.constant dense<0xFF800000> : vector<8xf32>
      %82 = vector.multi_reduction <maximumf>, %80, %cst_45 [1] : vector<8x8xf32> to vector<8xf32>
      %83 = vector.shape_cast %82 : vector<8xf32> to vector<8x1xf32>
      %84 = arith.maximumf %81, %83 : vector<8x1xf32>
      %85 = arith.subf %81, %84 : vector<8x1xf32>
      %86 = math.exp %85 : vector<8x1xf32>
      %87 = vector.broadcast %84 : vector<8x1xf32> to vector<8x8xf32>
      %88 = arith.subf %80, %87 : vector<8x8xf32>
      %89 = math.exp %88 : vector<8x8xf32>
      %c0_46 = arith.constant 0 : index
      %c2_47 = arith.constant 2 : index
      %90 = vector.load %arg11[%c0_46, %c2_47] : memref<8x4xf32, #tpu.memory_space<vmem>>, vector<8x1xf32>
      %91 = arith.mulf %86, %90 : vector<8x1xf32>
      %cst_48 = arith.constant dense<0.000000e+00> : vector<8xf32>
      %92 = vector.multi_reduction <add>, %89, %cst_48 [1] : vector<8x8xf32> to vector<8xf32>
      %93 = vector.shape_cast %92 : vector<8xf32> to vector<8x1xf32>
      %94 = arith.addf %91, %93 : vector<8x1xf32>
      %c0_49 = arith.constant 0 : index
      %c2_50 = arith.constant 2 : index
      %95 = vector.load %arg11[%c0_49, %c2_50] : memref<8x4xf32, #tpu.memory_space<vmem>>, vector<8x1xf32>
      tpu.vector_store %arg11[%c0_49, %c2_50], %94 {strides = array<i32>} : memref<8x4xf32, #tpu.memory_space<vmem>>, vector<8x1xf32>,
      %c0_51 = arith.constant 0 : index
      %c16 = arith.constant 16 : index
      %96 = vector.load %arg12[%c0_51, %c16] : memref<8x32xf32, #tpu.memory_space<vmem>>, vector<8x8xf32>
      %97 = vector.broadcast %86 : vector<8x1xf32> to vector<8x8xf32>
      %98 = arith.mulf %97, %96 : vector<8x8xf32>
      %99 = arith.truncf %89 : vector<8x8xf32> to vector<8x8xbf16>
      %100 = vector.extract_strided_slice %14 {offsets = [0, 16], sizes = [8, 8], strides = [1, 1]} : vector<8x32xbf16> to vector<8x8xbf16>
      %cst_52 = arith.constant dense<0.000000e+00> : vector<8x8xf32>
      %101 = tpu.matmul %99, %100, %cst_52 {dimension_numbers = #tpu.dot_dimension_numbers<[1], [0], [0], [1], [0, 0, 1, 1], [], []>} : vector<8x8xbf16>, vector<8x8xbf16>, vector<8x8xf32> -> vector<8x8xf32>
      %102 = arith.addf %98, %101 : vector<8x8xf32>
      %c0_53 = arith.constant 0 : index
      %c16_54 = arith.constant 16 : index
      %103 = vector.load %arg12[%c0_53, %c16_54] : memref<8x32xf32, #tpu.memory_space<vmem>>, vector<8x8xf32>
      tpu.vector_store %arg12[%c0_53, %c16_54], %102 {strides = array<i32>} : memref<8x32xf32, #tpu.memory_space<vmem>>, vector<8x8xf32>,
      %c0_55 = arith.constant 0 : index
      %c2_56 = arith.constant 2 : index
      %104 = vector.load %arg10[%c0_55, %c2_56] : memref<8x4xf32, #tpu.memory_space<vmem>>, vector<8x1xf32>
      tpu.vector_store %arg10[%c0_55, %c2_56], %84 {strides = array<i32>} : memref<8x4xf32, #tpu.memory_space<vmem>>, vector<8x1xf32>,
      %105 = vector.extract_strided_slice %10 {offsets = [0, 24], sizes = [8, 8], strides = [1, 1]} : vector<8x32xbf16> to vector<8x8xbf16>
      %106 = vector.extract_strided_slice %12 {offsets = [0, 24], sizes = [8, 8], strides = [1, 1]} : vector<8x32xbf16> to vector<8x8xbf16>
      %cst_57 = arith.constant dense<0.000000e+00> : vector<8x8xf32>
      %107 = tpu.matmul %105, %106, %cst_57 {dimension_numbers = #tpu.dot_dimension_numbers<[1], [1], [0], [0], [0, 0, 1, 0], [], []>} : vector<8x8xbf16>, vector<8x8xbf16>, vector<8x8xf32> -> vector<8x8xf32>
      %cst_58 = arith.constant -1.000000e+30 : f32
      %108 = vector.broadcast %cst_58 : f32 to vector<8x8xf32>
      %109 = arith.select %17, %107, %108 : vector<8x8xi1>, vector<8x8xf32>
      %c0_59 = arith.constant 0 : index
      %c3 = arith.constant 3 : index
      %110 = vector.load %arg10[%c0_59, %c3] : memref<8x4xf32, #tpu.memory_space<vmem>>, vector<8x1xf32>
      %cst_60 = arith.constant dense<0xFF800000> : vector<8xf32>
      %111 = vector.multi_reduction <maximumf>, %109, %cst_60 [1] : vector<8x8xf32> to vector<8xf32>
      %112 = vector.shape_cast %111 : vector<8xf32> to vector<8x1xf32>
      %113 = arith.maximumf %110, %112 : vector<8x1xf32>
      %114 = arith.subf %110, %113 : vector<8x1xf32>
      %115 = math.exp %114 : vector<8x1xf32>
      %116 = vector.broadcast %113 : vector<8x1xf32> to vector<8x8xf32>
      %117 = arith.subf %109, %116 : vector<8x8xf32>
      %118 = math.exp %117 : vector<8x8xf32>
      %c0_61 = arith.constant 0 : index
      %c3_62 = arith.constant 3 : index
      %119 = vector.load %arg11[%c0_61, %c3_62] : memref<8x4xf32, #tpu.memory_space<vmem>>, vector<8x1xf32>
      %120 = arith.mulf %115, %119 : vector<8x1xf32>
      %cst_63 = arith.constant dense<0.000000e+00> : vector<8xf32>
      %121 = vector.multi_reduction <add>, %118, %cst_63 [1] : vector<8x8xf32> to vector<8xf32>
      %122 = vector.shape_cast %121 : vector<8xf32> to vector<8x1xf32>
      %123 = arith.addf %120, %122 : vector<8x1xf32>
      %c0_64 = arith.constant 0 : index
      %c3_65 = arith.constant 3 : index
      %124 = vector.load %arg11[%c0_64, %c3_65] : memref<8x4xf32, #tpu.memory_space<vmem>>, vector<8x1xf32>
      tpu.vector_store %arg11[%c0_64, %c3_65], %123 {strides = array<i32>} : memref<8x4xf32, #tpu.memory_space<vmem>>, vector<8x1xf32>,
      %c0_66 = arith.constant 0 : index
      %c24 = arith.constant 24 : index
      %125 = vector.load %arg12[%c0_66, %c24] : memref<8x32xf32, #tpu.memory_space<vmem>>, vector<8x8xf32>
      %126 = vector.broadcast %115 : vector<8x1xf32> to vector<8x8xf32>
      %127 = arith.mulf %126, %125 : vector<8x8xf32>
      %128 = arith.truncf %118 : vector<8x8xf32> to vector<8x8xbf16>
      %129 = vector.extract_strided_slice %14 {offsets = [0, 24], sizes = [8, 8], strides = [1, 1]} : vector<8x32xbf16> to vector<8x8xbf16>
      %cst_67 = arith.constant dense<0.000000e+00> : vector<8x8xf32>
      %130 = tpu.matmul %128, %129, %cst_67 {dimension_numbers = #tpu.dot_dimension_numbers<[1], [0], [0], [1], [0, 0, 1, 1], [], []>} : vector<8x8xbf16>, vector<8x8xbf16>, vector<8x8xf32> -> vector<8x8xf32>
      %131 = arith.addf %127, %130 : vector<8x8xf32>
      %c0_68 = arith.constant 0 : index
      %c24_69 = arith.constant 24 : index
      %132 = vector.load %arg12[%c0_68, %c24_69] : memref<8x32xf32, #tpu.memory_space<vmem>>, vector<8x8xf32>
      tpu.vector_store %arg12[%c0_68, %c24_69], %131 {strides = array<i32>} : memref<8x32xf32, #tpu.memory_space<vmem>>, vector<8x8xf32>,
      %c0_70 = arith.constant 0 : index
      %c3_71 = arith.constant 3 : index
      %133 = vector.load %arg10[%c0_70, %c3_71] : memref<8x4xf32, #tpu.memory_space<vmem>>, vector<8x1xf32>
      tpu.vector_store %arg10[%c0_70, %c3_71], %113 {strides = array<i32>} : memref<8x4xf32, #tpu.memory_space<vmem>>, vector<8x1xf32>,
      %c0_72 = arith.constant 0 : index
      %c0_73 = arith.constant 0 : index
      %134 = vector.load %arg11[%c0_72, %c0_73] : memref<8x4xf32, #tpu.memory_space<vmem>>, vector<8x4xf32>
      %135 = tpu.reciprocal %134 {approx = true} : vector<8x4xf32> -> vector<8x4xf32>
      %c0_74 = arith.constant 0 : index
      %c0_75 = arith.constant 0 : index
      %136 = vector.load %arg12[%c0_74, %c0_75] : memref<8x32xf32, #tpu.memory_space<vmem>>, vector<8x8xf32>
      %137 = vector.extract_strided_slice %135 {offsets = [0, 0], sizes = [8, 1], strides = [1, 1]} : vector<8x4xf32> to vector<8x1xf32>
      %138 = vector.broadcast %137 : vector<8x1xf32> to vector<8x8xf32>
      %139 = arith.mulf %136, %138 : vector<8x8xf32>
      %c0_76 = arith.constant 0 : index
      %c0_77 = arith.constant 0 : index
      %140 = vector.load %arg12[%c0_76, %c0_77] : memref<8x32xf32, #tpu.memory_space<vmem>>, vector<8x8xf32>
      tpu.vector_store %arg12[%c0_76, %c0_77], %139 {strides = array<i32>} : memref<8x32xf32, #tpu.memory_space<vmem>>, vector<8x8xf32>,
      %c0_78 = arith.constant 0 : index
      %c8_79 = arith.constant 8 : index
      %141 = vector.load %arg12[%c0_78, %c8_79] : memref<8x32xf32, #tpu.memory_space<vmem>>, vector<8x8xf32>
      %142 = vector.extract_strided_slice %135 {offsets = [0, 1], sizes = [8, 1], strides = [1, 1]} : vector<8x4xf32> to vector<8x1xf32>
      %143 = vector.broadcast %142 : vector<8x1xf32> to vector<8x8xf32>
      %144 = arith.mulf %141, %143 : vector<8x8xf32>
      %c0_80 = arith.constant 0 : index
      %c8_81 = arith.constant 8 : index
      %145 = vector.load %arg12[%c0_80, %c8_81] : memref<8x32xf32, #tpu.memory_space<vmem>>, vector<8x8xf32>
      tpu.vector_store %arg12[%c0_80, %c8_81], %144 {strides = array<i32>} : memref<8x32xf32, #tpu.memory_space<vmem>>, vector<8x8xf32>,
      %c0_82 = arith.constant 0 : index
      %c16_83 = arith.constant 16 : index
      %146 = vector.load %arg12[%c0_82, %c16_83] : memref<8x32xf32, #tpu.memory_space<vmem>>, vector<8x8xf32>
      %147 = vector.extract_strided_slice %135 {offsets = [0, 2], sizes = [8, 1], strides = [1, 1]} : vector<8x4xf32> to vector<8x1xf32>
      %148 = vector.broadcast %147 : vector<8x1xf32> to vector<8x8xf32>
      %149 = arith.mulf %146, %148 : vector<8x8xf32>
      %c0_84 = arith.constant 0 : index
      %c16_85 = arith.constant 16 : index
      %150 = vector.load %arg12[%c0_84, %c16_85] : memref<8x32xf32, #tpu.memory_space<vmem>>, vector<8x8xf32>
      tpu.vector_store %arg12[%c0_84, %c16_85], %149 {strides = array<i32>} : memref<8x32xf32, #tpu.memory_space<vmem>>, vector<8x8xf32>,
      %c0_86 = arith.constant 0 : index
      %c24_87 = arith.constant 24 : index
      %151 = vector.load %arg12[%c0_86, %c24_87] : memref<8x32xf32, #tpu.memory_space<vmem>>, vector<8x8xf32>
      %152 = vector.extract_strided_slice %135 {offsets = [0, 3], sizes = [8, 1], strides = [1, 1]} : vector<8x4xf32> to vector<8x1xf32>
      %153 = vector.broadcast %152 : vector<8x1xf32> to vector<8x8xf32>
      %154 = arith.mulf %151, %153 : vector<8x8xf32>
      %c0_88 = arith.constant 0 : index
      %c24_89 = arith.constant 24 : index
      %155 = vector.load %arg12[%c0_88, %c24_89] : memref<8x32xf32, #tpu.memory_space<vmem>>, vector<8x8xf32>
      tpu.vector_store %arg12[%c0_88, %c24_89], %154 {strides = array<i32>} : memref<8x32xf32, #tpu.memory_space<vmem>>, vector<8x8xf32>,
      %c0_90 = arith.constant 0 : index
      %c0_91 = arith.constant 0 : index
      %156 = vector.load %arg12[%c0_90, %c0_91] : memref<8x32xf32, #tpu.memory_space<vmem>>, vector<8x32xf32>
      %157 = arith.truncf %156 : vector<8x32xf32> to vector<8x32xbf16>
      %c0_92 = arith.constant 0 : index
      %c0_93 = arith.constant 0 : index
      %158 = vector.load %arg7[%c0_92, %c0_93] : memref<32x32xbf16, #tpu.memory_space<vmem>>, vector<32x32xbf16>
      %cst_94 = arith.constant dense<0.000000e+00> : vector<8x32xf32>
      %159 = tpu.matmul %157, %158, %cst_94 {dimension_numbers = #tpu.dot_dimension_numbers<[1], [0], [0], [1], [0, 0, 1, 1], [], []>} : vector<8x32xbf16>, vector<32x32xbf16>, vector<8x32xf32> -> vector<8x32xf32>
      %c0_95 = arith.constant 0 : index
      %c0_96 = arith.constant 0 : index
      %160 = vector.load %arg8[%c0_95, %c0_96] : memref<1x32xf32, #tpu.memory_space<vmem>>, vector<1x32xf32>
      %161 = vector.broadcast %160 : vector<1x32xf32> to vector<8x32xf32>
      %162 = arith.addf %159, %161 : vector<8x32xf32>
      %c0_97 = arith.constant 0 : index
      %c0_98 = arith.constant 0 : index
      %c0_99 = arith.constant 0 : index
      %163 = vector.load %arg6[%c0_97, %c0_98, %c0_99] : memref<1x8x32xf32, #tpu.memory_space<vmem>>, vector<1x8x32xf32>
      %164 = vector.shape_cast %163 : vector<1x8x32xf32> to vector<8x32xf32>
      %165 = arith.addf %164, %162 : vector<8x32xf32>
      %c0_100 = arith.constant 0 : index
      %c0_101 = arith.constant 0 : index
      %c0_102 = arith.constant 0 : index
      %166 = vector.load %arg9[%c0_100, %c0_101, %c0_102] : memref<1x8x32xf32, #tpu.memory_space<vmem>>, vector<1x8x32xf32>
      %167 = vector.shape_cast %166 : vector<1x8x32xf32> to vector<8x32xf32>
      %168 = vector.shape_cast %165 : vector<8x32xf32> to vector<1x8x32xf32>
      tpu.vector_store %arg9[%c0_100, %c0_101, %c0_102], %168 {strides = array<i32>} : memref<1x8x32xf32, #tpu.memory_space<vmem>>, vector<1x8x32xf32>,
    } else {
    }
    return
  }
  func.func @transform_0(%arg0: i32, %arg1: i32, %arg2: i32) -> (i32, i32, i32) {
    %c0_i32 = arith.constant 0 : i32
    %c0_i32_0 = arith.constant 0 : i32
    return %arg0, %arg1, %c0_i32 : i32, i32, i32
  }
  func.func @transform_1(%arg0: i32, %arg1: i32, %arg2: i32) -> (i32, i32, i32) {
    %0 = arith.minsi %arg2, %arg1 : i32
    %c0_i32 = arith.constant 0 : i32
    %c0_i32_0 = arith.constant 0 : i32
    return %arg0, %0, %c0_i32 : i32, i32, i32
  }
  func.func @transform_2(%arg0: i32, %arg1: i32, %arg2: i32) -> (i32, i32, i32) {
    %0 = arith.minsi %arg2, %arg1 : i32
    %c0_i32 = arith.constant 0 : i32
    %c0_i32_0 = arith.constant 0 : i32
    return %arg0, %0, %c0_i32 : i32, i32, i32
  }
  func.func @transform_3(%arg0: i32, %arg1: i32, %arg2: i32) -> (i32, i32, i32) {
    %c0_i32 = arith.constant 0 : i32
    %c0_i32_0 = arith.constant 0 : i32
    return %arg0, %arg1, %c0_i32 : i32, i32, i32
  }
  func.func @transform_4(%arg0: i32, %arg1: i32, %arg2: i32) -> (i32, i32) {
    %c0_i32 = arith.constant 0 : i32
    %c0_i32_0 = arith.constant 0 : i32
    %c0_i32_1 = arith.constant 0 : i32
    return %c0_i32, %c0_i32_0 : i32, i32
  }
  func.func @transform_5(%arg0: i32, %arg1: i32, %arg2: i32) -> (i32, i32) {
    %c0_i32 = arith.constant 0 : i32
    %c0_i32_0 = arith.constant 0 : i32
    %c0_i32_1 = arith.constant 0 : i32
    return %c0_i32, %c0_i32_0 : i32, i32
  }
  func.func @transform_6(%arg0: i32, %arg1: i32, %arg2: i32) -> (i32, i32, i32) {
    %c0_i32 = arith.constant 0 : i32
    %c0_i32_0 = arith.constant 0 : i32
    return %arg0, %arg1, %c0_i32 : i32, i32, i32
  }
}

</mosaic_0001>

<bundles_post_ra>
// kernel: opt_decoder_layer_forward.5
= control target key start
LH: loop header
LB: loop body
LE: loop exit
PB: predicated region body
PF: predicated region fallthrough
CT: control target
= control target key end

     0   :  { %vm34_vm0 = vcmask 261120   ;;  %s478_s0 = inlined_call_operand.vmem [shape: f32[16,32], index: 0, kind: input, shape index: {}]   ;;  %s479_s1 = inlined_call_operand.vmem [shape: f32[1,32], index: 1, kind: input, shape index: {}]   ;;  %s480_s2 = inlined_call_operand.vmem [shape: f32[1,32], index: 2, kind: input, shape index: {}]   ;;  %s481_s3 = inlined_call_operand.vmem [shape: bf16[32,64], index: 3, kind: input, shape index: {}]   ;;  %s482_s4 = inlined_call_operand.vmem [shape: f32[1,64], index: 4, kind: input, shape index: {}]   ;;  %s483_s5 = inlined_call_operand.vmem [shape: bf16[64,32], index: 5, kind: input, shape index: {}]   ;;  %s484_s6 = inlined_call_operand.vmem [shape: f32[1,32], index: 6, kind: input, shape index: {}]   ;;  %s485_s7 = inlined_call_operand.hbm [shape: f32[16,32], index: 7, kind: output, shape index: {}]  }
   0x1   :  { %v421_v0 = vld [vmem:[%s478_s0] sm:$0xff]  ;;  %v426_v1 = vld [vmem:[%s478_s0 + $0x8] sm:$0xff] }
   0x2   :  { %v35_v2 = vsel %vm34_vm0, %v421_v0, 0.0  ;;  %v38_v3 = vsel %vm34_vm0, %v426_v1, 0.0 }
   0x3   :  { %36 = vadd.xlane.f32.xlu0 %v35_v2 }
   0x4   :  { %12 = vsyncpa [#allocation5], 0  ;;  %v340_v14 = vld [vmem:[%s481_s3 + $0x8] sm:$0xff]   ;;  %v373_v15 = vmov 0.0   ;;  %vm374_vm1 = vmmov 0   ;;  %v341_v16 = vld [vmem:[%s481_s3] sm:$0xff]  }
   0x5   :  { %315 = vmatprep.subr.bf16.mxu0 %v373_v15  ;;  %91 = vst.msk [vmem:[#allocation3] sm:$0xff] %vm34_vm0, %v373_v15  ;;  %92 = vst.msk [vmem:[#allocation3 + $0x8] sm:$0xff] %vm34_vm0, %v373_v15  ;;  %319 = vmatprep.mubr.msk.bf16.mxu0 %vm374_vm1, %v373_v15  ;;  %v343_v17 = vld [vmem:[%s483_s5 + $0x18] sm:$0xff]   ;;  %v290_v25 = vld [vmem:[%s479_s1] ss:$0 sm:$0xff]  ;;  %vm88_vm2 = vcmask 257024  }
   0x6   :  { %316 = vmatpush3.bf16.msra.mxu0 %v340_v14  ;;  %323 = vmatprep.subr.bf16.mxu1 %v373_v15  ;;  %v291_v27 = vld [vmem:[%s480_s2] ss:$0 sm:$0xff]  ;;  %v344_v37 = vld [vmem:[%s483_s5 + $0x10] sm:$0xff]   ;;  %v345_v38 = vld [vmem:[%s483_s5 + $0x8] sm:$0xff]   ;;  %vm205_vm3 = vcmask 523264   ;;  %s375_s19 = smov [#allocation4]  }
   0x7   :  { %39 = vadd.xlane.f32.xlu0 %v38_v3  ;;  %317 = vmatprep.subr.bf16.mxu0 %v373_v15  ;;  %v346_v39 = vld [vmem:[%s483_s5] sm:$0xff]   ;;  %s279_s20 = sshll.u32 %s375_s19, 4  ;;  %s280_s20 = int_to_ptr.vmem [resolvable:$true] %s279_s20 }
   0x8   :  { %331 = vmatprep.mubr.msk.bf16.mxu1 %vm374_vm1, %v373_v15  ;;  %324 = vmatpush3.bf16.msra.mxu1 %v343_v17  ;;  %v294_v40 = vld [vmem:[%s482_s4] ss:$0 sm:$0xff]  ;;  %s351_s21 = scalar_lea.vmem %s280_s20, 256  ;;  %p356_p1 = scmp.lt.s32.totalorder %s280_s20, %s280_s20 }
   0x9   :  { %325 = vmatprep.subr.bf16.mxu1 %v373_v15  ;;  %v304_v59 = vld [vmem:[%s484_s6] ss:$0 sm:$0xff]  ;;  %p352_p0 = scmp.ne.s32.totalorder %s280_s20, %s351_s21  ;;  %p357_p2 = scmp.lt.s32.totalorder %s351_s21, %s351_s21 }
   0xa   :  { %318 = vmatpush3.bf16.msra.mxu0 %v341_v16 }
   0xb   :  { %p358_p3 = por %p357_p2, %p356_p1 }
   0xc   :  { %326 = vmatpush3.bf16.msra.mxu1 %v344_v37  ;;  %v170_v50 = vld [vmem:[#allocation3] sm:$0xff]  ;;  %v171_v54 = vld [vmem:[#allocation3 + $0x8] sm:$0xff] }
   0xd   :  { %327 = vmatprep.subr.bf16.mxu1 %v373_v15  ;;  %p359_p4 = pnand %p358_p3, %p352_p0 }
  0x10   :  { %328 = vmatpush3.bf16.msra.mxu1 %v345_v38 }
  0x11   :  { %329 = vmatprep.subr.bf16.mxu1 %v373_v15 }
  0x14   :  { %330 = vmatpush3.bf16.msra.mxu1 %v346_v39 }
  0x8c   :  { %v37_v4 = vpop.xlane.xlu0 %36 }
  0x8d   :  { %v42_v5 = vmul.f32 0.03125, %v37_v4 }
  0x8f   :  { %v44_v6 = vsub.f32 %v421_v0, %v42_v5 }
  0x90   :  { %v40_v7 = vpop.xlane.xlu0 %39 }
  0x91   :  { %v43_v8 = vmul.f32 0.03125, %v40_v7  ;;  %v46_v9 = vmul.f32 %v44_v6, %v44_v6 }
  0x93   :  { %v45_v10 = vsub.f32 %v426_v1, %v43_v8  ;;  %v48_v11 = vsel %vm34_vm0, %v46_v9, 0.0 }
  0x94   :  { %49 = vadd.xlane.f32.xlu1 %v48_v11 }
  0x95   :  { %v47_v12 = vmul.f32 %v45_v10, %v45_v10 }
  0x97   :  { %v51_v13 = vsel %vm34_vm0, %v47_v12, 0.0 }
  0x98   :  { %52 = vadd.xlane.f32.xlu1 %v51_v13 }
 0x11d   :  { %v50_v18 = vpop.xlane.xlu1 %49 }
 0x11e   :  { %v54_v19 = vmul.f32 0.03125, %v50_v18 }
 0x120   :  { %v56_v20 = vadd.f32 1e-05, %v54_v19 }
 0x121   :  { %v53_v21 = vpop.xlane.xlu1 %52 }
 0x122   :  { %347 = vrsqrt.f32 %v56_v20  ;;  %v55_v22 = vmul.f32 0.03125, %v53_v21 }
 0x124   :  { %v57_v23 = vadd.f32 1e-05, %v55_v22 }
 0x126   :  { %349 = vrsqrt.f32 %v57_v23 }
 0x12f   :  { %v348_v24 = vpop.eup %347 }
 0x130   :  { %v60_v26 = vmul.f32 %v348_v24, %v44_v6 }
 0x132   :  { %v69_v28 = vmul.f32 %v290_v25, %v60_v26 }
 0x133   :  { %v350_v29 = vpop.eup %349 }
 0x134   :  { %v78_v30 = vadd.f32 %v291_v27, %v69_v28  ;;  %v61_v31 = vmul.f32 %v350_v29, %v45_v10 }
 0x136   :  { %v305_v32 = vpack.c.bf16 %v78_v30, %v78_v30  ;;  %v70_v33 = vmul.f32 %v290_v25, %v61_v31 }
 0x138   :  { %89 = vst.msk [vmem:[#allocation2] sm:$0xf] %vm88_vm2, %v305_v32  ;;  %v79_v34 = vadd.f32 %v291_v27, %v70_v33 }
 0x13a   :  { %v306_v35 = vpack.c.bf16 %v79_v34, %v79_v34 }
 0x13c   :  { %90 = vst.msk [vmem:[#allocation2 + $0x4] sm:$0xf] %vm88_vm2, %v306_v35 }
 0x143   :  { %v342_v36 = vld [vmem:[#allocation2] sm:$0xff]  }
 0x144   :  { %320 = vmatmul.mubr.msk.bf16.vlgmr.msra.gmra.mxu0 %vm34_vm0, %v342_v36 }
 0x204   :  { %v161_v41 = vpop.f32.mrf.mxu0 }
 0x205   :  { %v162_v43 = vadd.f32 %v294_v40, %v161_v41 }
 0x206   :  { %v321_v42 = vpop.f32.mrf.mxu0 }
 0x207   :  { %v168_v47 = vmax.f32 %v162_v43, 0.0 }
 0x208   :  { %v164_v44 = vpop.f32.mrf.mxu0 }
 0x209   :  { %v165_v45 = vadd.f32 %v294_v40, %v164_v44 }
 0x20a   :  { %v322_v46 = vpop.f32.mrf.mxu0 }
 0x20b   :  { %v169_v48 = vmax.f32 %v165_v45, 0.0 }
 0x20d   :  { %v172_v49 = vpack.c.bf16 %v169_v48, %v168_v47 }
 0x20f   :  { %332 = vmatmul.mubr.msk.bf16.vlgmr.msra.gmra.mxu1 %vm205_vm3, %v172_v49 }
 0x2cf   :  { %v243_v51 = vpop.f32.mrf.mxu1 }
 0x2d0   :  { %v250_v52 = vadd.f32 %v243_v51, %v170_v50 }
 0x2d1   :  { %v333_v53 = vpop.f32.mrf.mxu1 }
 0x2d2   :  { %252 = vst.msk [vmem:[#allocation3] sm:$0xff] %vm34_vm0, %v250_v52 }
 0x2d3   :  { %v246_v55 = vpop.f32.mrf.mxu1 }
 0x2d4   :  { %v251_v56 = vadd.f32 %v246_v55, %v171_v54 }
 0x2d5   :  { %v334_v57 = vpop.f32.mrf.mxu1 }
 0x2d6   :  { %253 = vst.msk [vmem:[#allocation3 + $0x8] sm:$0xff] %vm34_vm0, %v251_v56 }
 0x2d9   :  { %v259_v58 = vld [vmem:[#allocation3] sm:$0xff] }
 0x2da   :  { %v261_v60 = vadd.f32 %v259_v58, %v421_v0 }
 0x2dc   :  { %v270_v61 = vadd.f32 %v304_v59, %v261_v60 }
 0x2dd   :  { %v260_v62 = vld [vmem:[#allocation3 + $0x8] sm:$0xff] }
 0x2de   :  { %v262_v63 = vadd.f32 %v260_v62, %v426_v1  ;;  %272 = vst.msk [vmem:[#allocation4] sm:$0xff] %vm34_vm0, %v270_v61 }
 0x2e0   :  { %v271_v2 = vadd.f32 %v304_v59, %v262_v63 }
 0x2e2   :  { %273 = vst.msk [vmem:[#allocation4 + $0x8] sm:$0xff] %vm34_vm0, %v271_v2 }
 0x2e3   :  { %362 = shalt.err (!%p359_p4)
}
 0x2e4   :  { %s376_s6 = smov 128   ;;  %s377_s22 = smov 8  }
 0x2e5   :  { %285 = dma.vmem_to_hbm [thread:$0]  %s280_s20, 256, %s485_s7, [#allocation5], %s376_s6, %s376_s6, %s377_s22  }
 0x2e6   :  { %371 = dma.done.wait [#allocation5], 256  }
 0x2e7   :  { %372 = vsyncadd [#allocation5], 4294967040 }
 0x2e8   :  { %289 = vsyncpa [#allocation5], 1 }

// kernel: opt_decoder_layer_forward.3
= control target key start
LH: loop header
LB: loop body
LE: loop exit
PB: predicated region body
PF: predicated region fallthrough
CT: control target
= control target key end

     0   :  { %s742_s24 = smov 0   ;;  %s744_s25 = smov 0   ;;  %s803_s0 = inlined_call_operand.vmem [shape: f32[2,8,32], index: 0, kind: input, shape index: {}]   ;;  %s804_s1 = inlined_call_operand.vmem [shape: f32[1,32], index: 1, kind: input, shape index: {}]   ;;  %s805_s2 = inlined_call_operand.vmem [shape: f32[1,32], index: 2, kind: input, shape index: {}]   ;;  %s806_s3 = inlined_call_operand.vmem [shape: bf16[32,96], index: 3, kind: input, shape index: {}]   ;;  %s807_s4 = inlined_call_operand.vmem [shape: f32[1,96], index: 4, kind: input, shape index: {}]   ;;  %s808_s5 = inlined_call_operand.vmem [shape: bf16[2,8,32], index: 5, kind: output, shape index: {0}]   ;;  %s809_s6 = inlined_call_operand.vmem [shape: bf16[2,8,32], index: 6, kind: output, shape index: {1}]   ;;  %s810_s7 = inlined_call_operand.vmem [shape: bf16[2,8,32], index: 7, kind: output, shape index: {2}]  }
   0x1   :  { %s746_s26 = smov 0  }
   0x2 LB: > { %s30_s27 = sadd.s32 1, %s692_s25  ;;  %p616_p0 = scmp.ge.s32.totalorder %s696_s26, 1  ;;  %s696_s26 = sphi %s746_s26, %s18_s26   ;;  %s692_s25 = sphi %s744_s25, %s812_s25   ;;  %s688_s24 = sphi %s742_s24, %s811_s24  }
   0x3   : > { %p32_p1 = scmp.ge.s32.totalorder %s30_s27, 2  ;;  %p264_p2 = scmp.lt.s32.totalorder %s696_s26, 3 }
   0x5   : > { %s814_s27 = smov (%p32_p1, %s30_s27), 0  ;;  %p265_p3 = pnand %p616_p0, %p264_p2 }
   0x6   : > { %p314_p4 = scmp.lt.s32.totalorder (!%p265_p3), %s688_s24, 1  ;;  %s700_s23 = smov (!%p265_p3), 96  }
   0x7   : > { %268 = sbr.rel (%p265_p3) target bundleno = 643 (0x283), region = 40 }
   0xc   : > { %s816_s24 = smov (!%p314_p4, %s688_s24), 1  ;;  %vm344_vm0 = vcmask 261120   ;;  %v670_v7 = vld [vmem:[%s806_s3 + $0x8] sm:$0xff]   ;;  %v698_v8 = vmov 0.0   ;;  %vm699_vm1 = vmmov 0   ;;  %v671_v9 = vld [vmem:[%s806_s3] sm:$0xff]  }
   0xd   : > { %s617_s28 = sshll.u32 %s816_s24, 3  ;;  %634 = vmatprep.subr.bf16.mxu0 %v698_v8  ;;  %638 = vmatprep.mubr.msk.bf16.mxu0 %vm699_vm1, %v698_v8  ;;  %v621_v14 = vld [vmem:[%s804_s1] ss:$0 sm:$0xff]  ;;  %s618_s19 = sshll.u32 %s816_s24, 2  ;;  %vm443_vm2 = vcmask 257024  }
   0xe   : > { %s320_s8 = scalar_lea.vmem %s803_s0, %s617_s28  ;;  %635 = vmatpush3.bf16.msra.mxu0 %v670_v7  ;;  %v622_v16 = vld [vmem:[%s805_s2] ss:$0 sm:$0xff]  ;;  %s327_s22 = scalar_lea.vmem %s808_s5, %s618_s19 }
   0xf   : > { %v343_v0 = vld [vmem:[%s320_s8] sm:$0xff]  ;;  %636 = vmatprep.subr.bf16.mxu0 %v698_v8  ;;  %s701_s28 = smov 64   ;;  %s334_s24 = scalar_lea.vmem %s809_s6, %s618_s19 }
  0x10   : > { %v345_v1 = vsel %vm344_vm0, %v343_v0, 0.0  ;;  %v623_v20 = vld [vmem:[%s807_s4] ss:$0 sm:$0xff]  ;;  %s341_s10 = scalar_lea.vmem %s810_s7, %s618_s19 }
  0x11   : > { %346 = vadd.xlane.f32.xlu0 %v345_v1 }
  0x12   : > { %637 = vmatpush3.bf16.msra.mxu0 %v671_v9 }
  0x9a   : > { %v347_v2 = vpop.xlane.xlu0 %346 }
  0x9b   : > { %v349_v3 = vmul.f32 0.03125, %v347_v2 }
  0x9d   : > { %v350_v4 = vsub.f32 %v343_v0, %v349_v3 }
  0x9f   : > { %v351_v5 = vmul.f32 %v350_v4, %v350_v4 }
  0xa1   : > { %v352_v6 = vsel %vm344_vm0, %v351_v5, 0.0 }
  0xa2   : > { %353 = vadd.xlane.f32.xlu0 %v352_v6 }
 0x12b   : > { %v354_v10 = vpop.xlane.xlu0 %353 }
 0x12c   : > { %v355_v11 = vmul.f32 0.03125, %v354_v10 }
 0x12e   : > { %v356_v12 = vadd.f32 1e-05, %v355_v11 }
 0x130   : > { %672 = vrsqrt.f32 %v356_v12 }
 0x13d   : > { %v673_v13 = vpop.eup %672 }
 0x13e   : > { %v358_v15 = vmul.f32 %v673_v13, %v350_v4 }
 0x140   : > { %v366_v17 = vmul.f32 %v621_v14, %v358_v15 }
 0x142   : > { %v374_v18 = vadd.f32 %v622_v16, %v366_v17 }
 0x144   : > { %v375_v19 = vpack.c.bf16 %v374_v18, %v374_v18 }
 0x146   : > { %639 = vmatmul.mubr.msk.bf16.vlgmr.msra.gmra.mxu0 %vm344_vm0, %v375_v19 }
 0x206   : > { %v436_v21 = vpop.f32.mrf.mxu0 }
 0x207   : > { %v437_v22 = vadd.f32 %v623_v20, %v436_v21 }
 0x208   : > { %v640_v23 = vpop.f32.mrf.mxu0 }
 0x209   : > { %v442_v24 = vpack.c.bf16 %v437_v22, %v437_v22 }
 0x20a   : > { %v439_v25 = vpop.f32.mrf.mxu0 }
 0x20b   : > { %448 = vrot.lane.b32.xlu1 %v442_v24, %s700_s23  ;;  %444 = vst.msk [vmem:[%s327_s22] sm:$0xf] %vm443_vm2, %v442_v24 }
 0x20c   : > { %v641_v26 = vpop.f32.mrf.mxu0 }
 0x20f   : > { %452 = vrot.lane.b32.xlu1 %v442_v24, %s701_s28 }
 0x27d   : > { %v449_v27 = vpop.permute.xlu1 %448 }
 0x27e   : > { %451 = vst.msk [vmem:[%s334_s24] sm:$0xf] %vm443_vm2, %v449_v27 }
 0x281   : > { %v453_v28 = vpop.permute.xlu1 %452 }
 0x282   : > { %455 = vst.msk [vmem:[%s341_s10] sm:$0xf] %vm443_vm2, %v453_v28 }
 0x283 PF: > { %s18_s26 = sadd.s32 1, %s696_s26   ;;  %s811_s24 = smov %s692_s25 }
 0x284   : > { %p15_p5 = scmp.ge.s32.totalorder %s18_s26, 4   ;;  %s812_s25 = smov %s814_s27 }
 0x286   :  { %17 = sbr.rel (!%p15_p5) target bundleno = 2 (0x2), region = 94 }

// kernel: opt_decoder_layer_forward.4
= control target key start
LH: loop header
LB: loop body
LE: loop exit
PB: predicated region body
PF: predicated region fallthrough
CT: control target
= control target key end

     0   :  { %s2016_s21 = smov 0   ;;  %s2018_s22 = smov 0   ;;  %s2238_s0 = inlined_call_operand.vmem [shape: bf16[2,8,32], index: 0, kind: input, shape index: {}]   ;;  %s2239_s1 = inlined_call_operand.vmem [shape: bf16[2,8,32], index: 1, kind: input, shape index: {}]   ;;  %s2240_s2 = inlined_call_operand.vmem [shape: bf16[2,8,32], index: 2, kind: input, shape index: {}]   ;;  %s2241_s3 = inlined_call_operand.vmem [shape: f32[2,8,32], index: 3, kind: input, shape index: {}]   ;;  %s2242_s4 = inlined_call_operand.vmem [shape: bf16[32,32], index: 4, kind: input, shape index: {}]   ;;  %s2243_s5 = inlined_call_operand.vmem [shape: f32[1,32], index: 5, kind: input, shape index: {}]   ;;  %s2244_s6 = inlined_call_operand.vmem [shape: f32[2,8,32], index: 6, kind: output, shape index: {}]  }
   0x1   :  { %s2020_s23 = smov 0  }
   0x2 LB: > { %s35_s24 = sadd.s32 1, %s1962_s22  ;;  %p1763_p0 = scmp.ge.s32.totalorder %s1966_s23, 1  ;;  %s1966_s23 = sphi %s2020_s23, %s16_s23   ;;  %s1962_s22 = sphi %s2018_s22, %s2246_s22   ;;  %s1958_s21 = sphi %s2016_s21, %s2245_s21  }
   0x3   : > { %p37_p1 = scmp.ge.s32.totalorder %s35_s24, 2  ;;  %p295_p2 = scmp.lt.s32.totalorder %s1966_s23, 3 }
   0x5   : > { %s2248_s24 = smov (%p37_p1, %s35_s24), 0  ;;  %p296_p3 = pnand %p1763_p0, %p295_p2 }
   0x6   : > { %p354_p4 = scmp.lt.s32.totalorder (!%p296_p3), %s1958_s21, 1  ;;  %s1972_s8 = smov (!%p296_p3), 120  }
   0x7   : > { %299 = sbr.rel (%p296_p3) target bundleno = 1578 (0x62a), region = 44  ;;  %s1973_s9 = smov (!%p296_p3), 112  }
   0x8   : > { %s1974_s10 = smov (!%p296_p3), 104   ;;  %s1978_s14 = smov (!%p296_p3), 8  }
   0x9   : > { %s1979_s15 = smov (!%p296_p3), 16   ;;  %s1980_s16 = smov (!%p296_p3), 24  }
   0xc   : > { %v1968_v0 = vmov 0.0   ;;  %vm1969_vm0 = vmmov 0   ;;  %s2250_s21 = smov (!%p354_p4, %s1958_s21), 1  ;;  %vm978_vm1 = vcmask 64512   ;;  %vm402_vm2 = vcmask 31744  }
   0xd   : > { %1816 = vmatprep.subr.bf16.mxu0 %v1968_v0  ;;  %1818 = vmatprep.mubr.msk.bf16.mxu0 %vm1969_vm0, %v1968_v0  ;;  %s2043_s25 = sshll.u32 %s2250_s21, 2  ;;  %v1970_v4 = vmov -1e+30   ;;  %404 = vst.msk [vmem:[#allocation3] sm:$0xff] %vm402_vm2, %v1968_v0  ;;  %v973_v5 = vlaneseq  ;;  %v1971_v14 = vmov 0   ;;  %vm1048_vm4 = vcmask 7168  }
   0xe   : > { %1822 = vmatprep.subr.bf16.mxu1 %v1968_v0  ;;  %1824 = vmatprep.mubr.msk.bf16.mxu1 %vm1969_vm0, %v1968_v0  ;;  %s369_s28 = scalar_lea.vmem %s2239_s1, %s2043_s25  ;;  %s360_s7 = scalar_lea.vmem %s2238_s0, %s2043_s25  ;;  %403 = vst.msk [vmem:[#allocation2] sm:$0xff] %vm402_vm2, %v1970_v4  ;;  %vm1061_vm5 = vcmask 1043456   ;;  %v1975_v53 = vmov 1   ;;  %v1976_v60 = vmov 2   ;;  %vm1187_vm6 = vcmask 15368  }
   0xf   : > { %v971_v1 = vld [vmem:[%s369_s28] sm:$0xf]  ;;  %v2059_v6 = vshrl.u32 %v973_v5, 7  ;;  %v2061_v7 = vand.u32 127, %v973_v5  ;;  %1909 = vset.pattern.permute.xlu0 %v1971_v14  ;;  %s380_s13 = scalar_lea.vmem %s2240_s2, %s2043_s25  ;;  %1910 = vset.pattern.permute.xlu1 %v1975_v53  ;;  %v1977_v4 = vmov 3   ;;  %vm1329_vm7 = vcmask 23568  }
  0x10   : > { %v983_v2 = vsel %vm978_vm1, %v971_v1, 0  ;;  %v970_v3 = vld [vmem:[%s360_s7] sm:$0xf]  ;;  %v1783_v15 = vcombine.low %v971_v1, %v971_v1  ;;  %vm1468_vm8 = vcmask 31768   ;;  %vm405_vm9 = vcmask 261120   ;;  %s1767_s25 = sshll.u32 %s2250_s21, 3 }
  0x11   : > { %1817 = vmatpush3.bf16.xpose.msra.mxu0 %v983_v2  ;;  %vm977_vm3 = vcmp.le.s32.totalorder %v2061_v7, %v2059_v6  ;;  %v1782_v16 = vcombine.low %v970_v3, %v970_v3  ;;  %v2090_v21 = vld [vmem:[%s380_s13] sm:$0xf]  ;;  %406 = vst.msk [vmem:[#allocation4] sm:$0xff] %vm405_vm9, %v1968_v0  ;;  %vm1253_vm10 = vcmask 130112   ;;  %vm1392_vm11 = vcmask 195712   ;;  %s389_s28 = scalar_lea.vmem %s2241_s3, %s1767_s25 }
  0x12   : > { %1834 = vmatprep.subr.bf16.mxu0 %v1968_v0  ;;  %1116 = vrot.lane.b32.xlu1 %v1783_v15, %s1972_s8  ;;  %v1063_v22 = vsel %vm1061_vm5, %v2090_v21, 0  ;;  %v1785_v1 = vcombine.low %v2090_v21, %v2090_v21  ;;  %vm1531_vm12 = vcmask 261312  }
  0x13   : > { %1823 = vmatpush3.bf16.msra.mxu1 %v1063_v22 }
  0x14   : > { %1828 = vmatprep.subr.bf16.mxu1 %v1968_v0 }
  0x15   : > { %v2076_v17 = vld [vmem:[#allocation2] sm:$0xff] }
  0x16   : > { %1111 = vrot.lane.b32.xlu1 %v1782_v16, %s1972_s8 }
  0x18   : > { %1819 = vmatmul.mubr.msk.bf16.vlgmr.msra.gmra.mxu0 %vm978_vm1, %v970_v3 }
  0x19   : > { %1836 = vmatprep.mubr.msk.bf16.mxu0 %vm1969_vm0, %v1968_v0 }
  0x1a   : > { %1258 = vrot.lane.b32.xlu1 %v1783_v15, %s1973_s9 }
  0x1e   : > { %1256 = vrot.lane.b32.xlu1 %v1782_v16, %s1973_s9 }
  0x22   : > { %1397 = vrot.lane.b32.xlu1 %v1783_v15, %s1974_s10 }
  0x26   : > { %1395 = vrot.lane.b32.xlu1 %v1782_v16, %s1974_s10 }
  0x84   : > { %v1117_v26 = vpop.permute.xlu1 %1116 }
  0x85   : > { %v1122_v29 = vsel %vm978_vm1, %v1117_v26, 0 }
  0x88   : > { %v1112_v27 = vpop.permute.xlu1 %1111 }
  0x8c   : > { %v1259_v31 = vpop.permute.xlu1 %1258 }
  0x8d   : > { %v1264_v33 = vsel %vm978_vm1, %v1259_v31, 0 }
  0x90   : > { %v1257_v32 = vpop.permute.xlu1 %1256 }
  0x94   : > { %v1398_v34 = vpop.permute.xlu1 %1397 }
  0x95   : > { %v1403_v35 = vsel %vm978_vm1, %v1398_v34, 0 }
  0x98   : > { %v1396_v36 = vpop.permute.xlu1 %1395 }
  0xd8   : > { %v1019_v8 = vpop.f32.mrf.mxu0 }
  0xd9   : > { %v1025_v9 = vsel %vm977_vm3, %v1019_v8, -1e+30 }
  0xda   : > { %v1820_v10 = vpop.f32.mrf.mxu0  ;;  %v1027_v11 = vsel %vm978_vm1, %v1025_v9, -inf }
  0xdb   : > { %1028 = vmax.xlane.f32.xlu0 %v1027_v11 }
  0xdc   : > { %v1022_v12 = vpop.f32.mrf.mxu0 }
  0xde   : > { %v1821_v13 = vpop.f32.mrf.mxu0 }
 0x164   : > { %v1029_v18 = vpop.xlane.xlu0 %1028 }
 0x165   : > { %v2079_v19 = vmax.f32 %v2076_v17, %v1029_v18 }
 0x167   : > { %v1031_v20 = vsub.f32 %v2076_v17, %v2079_v19  ;;  %1107 = vst.msk [vmem:[#allocation2] sm:$0xff] %vm1048_vm4, %v2079_v19  ;;  %1036 = vperm.xlu0 %1909, %v2079_v19   ;;  %v1042_v17 = vld [vmem:[#allocation3] sm:$0xff] }
 0x16b   : > { %1911 = vset.pattern.permute.xlu0 %v1976_v60 }
 0x16e   : > { %v1165_v62 = vld [vmem:[#allocation2] sm:$0xff] }
 0x1e2   : > { %v1037_v23 = vpop.permute.xlu0 %1036 }
 0x1e3   : > { %v1039_v24 = vsub.f32 %v1025_v9, %v1037_v23 }
 0x1e5   : > { %v1040_v25 = vmul.f32 1.442695, %v1039_v24 }
 0x1e7   : > { %1926 = vpow2.f32 %v1040_v25 }
 0x1f4   : > { %v2095_v28 = vpop.eup %1926 }
 0x1f5   : > { %v1057_v30 = vpack.c.bf16 %v2095_v28, %v2095_v28  ;;  %v1044_v12 = vsel %vm978_vm1, %v2095_v28, 0.0 }
 0x1f7   : > { %1825 = vmatmul.mubr.msk.bf16.vlgmr.msra.gmra.mxu1 %vm978_vm1, %v1057_v30 }
 0x1f8   : > { %1829 = vmatpush3.bf16.xpose.msra.mxu1 %v1122_v29  ;;  %1830 = vmatprep.mubr.msk.bf16.mxu1 %vm1969_vm0, %v1968_v0 }
 0x1f9   : > { %1840 = vmatprep.subr.bf16.mxu1 %v1968_v0 }
 0x1ff   : > { %1831 = vmatmul.mubr.msk.bf16.vlgmr.msra.gmra.mxu1 %vm978_vm1, %v1112_v27 }
 0x200   : > { %1841 = vmatpush3.bf16.xpose.msra.mxu1 %v1264_v33  ;;  %1842 = vmatprep.mubr.msk.bf16.mxu1 %vm1969_vm0, %v1968_v0 }
 0x201   : > { %1852 = vmatprep.subr.bf16.mxu1 %v1968_v0 }
 0x207   : > { %1843 = vmatmul.mubr.msk.bf16.vlgmr.msra.gmra.mxu1 %vm978_vm1, %v1257_v32 }
 0x208   : > { %1853 = vmatpush3.bf16.xpose.msra.mxu1 %v1403_v35  ;;  %1854 = vmatprep.mubr.msk.bf16.mxu1 %vm1969_vm0, %v1968_v0 }
 0x209   : > { %1864 = vmatprep.subr.bf16.mxu1 %v1968_v0 }
 0x20f   : > { %1855 = vmatmul.mubr.msk.bf16.vlgmr.msra.gmra.mxu1 %vm978_vm1, %v1396_v36 }
 0x210   : > { %1868 = vmatprep.mubr.msk.bf16.mxu1 %vm1969_vm0, %v1968_v0 }
 0x2b7   : > { %v2117_v37 = vpop.f32.mrf.mxu1 }
 0x2b9   : > { %v1826_v38 = vpop.f32.mrf.mxu1 }
 0x2bb   : > { %v1102_v39 = vpop.f32.mrf.mxu1 }
 0x2bd   : > { %v1827_v40 = vpop.f32.mrf.mxu1 }
 0x2bf   : > { %v1158_v41 = vpop.f32.mrf.mxu1 }
 0x2c0   : > { %v1164_v42 = vsel %vm977_vm3, %v1158_v41, -1e+30  ;;  %v1032_v41 = vmul.f32 1.442695, %v1031_v20 }
 0x2c1   : > { %v1832_v43 = vpop.f32.mrf.mxu1  ;;  %v1166_v44 = vsel %vm978_vm1, %v1164_v42, -inf }
 0x2c2   : > { %1167 = vmax.xlane.f32.xlu1 %v1166_v44 }
 0x2c3   : > { %v1161_v45 = vpop.f32.mrf.mxu1 }
 0x2c5   : > { %v1833_v46 = vpop.f32.mrf.mxu1 }
 0x2c7   : > { %v1300_v47 = vpop.f32.mrf.mxu1 }
 0x2c8   : > { %v1306_v48 = vsel %vm977_vm3, %v1300_v47, -1e+30 }
 0x2c9   : > { %v1844_v49 = vpop.f32.mrf.mxu1  ;;  %v1308_v50 = vsel %vm978_vm1, %v1306_v48, -inf }
 0x2ca   : > { %1309 = vmax.xlane.f32.xlu0 %v1308_v50 }
 0x2cb   : > { %v1303_v51 = vpop.f32.mrf.mxu1 }
 0x2cd   : > { %v1845_v52 = vpop.f32.mrf.mxu1 }
 0x2cf   : > { %v1439_v54 = vpop.f32.mrf.mxu1 }
 0x2d0   : > { %v1445_v55 = vsel %vm977_vm3, %v1439_v54, -1e+30 }
 0x2d1   : > { %v1856_v56 = vpop.f32.mrf.mxu1  ;;  %v1447_v57 = vsel %vm978_vm1, %v1445_v55, -inf }
 0x2d2   : > { %1448 = vmax.xlane.f32.xlu1 %v1447_v57 }
 0x2d3   : > { %v1442_v58 = vpop.f32.mrf.mxu1 }
 0x2d5   : > { %v1857_v59 = vpop.f32.mrf.mxu1 }
 0x34b   : > { %v1168_v61 = vpop.xlane.xlu1 %1167 }
 0x34c   : > { %v1169_v63 = vmax.f32 %v1165_v62, %v1168_v61 }
 0x34e   : > { %v1170_v2 = vsub.f32 %v1165_v62, %v1169_v63  ;;  %1255 = vst.msk [vmem:[#allocation2] sm:$0xff] %vm1187_vm6, %v1169_v63  ;;  %1175 = vperm.xlu1 %1910, %v1169_v63   ;;  %v1050_v63 = vld [vmem:[#allocation4] sm:$0xff] }
 0x350   : > { %v1171_v31 = vmul.f32 1.442695, %v1170_v2 }
 0x352   : > { %1200 = vrot.lane.b32.xlu1 %v1785_v1, %s1972_s8 }
 0x353   : > { %v1310_v3 = vpop.xlane.xlu0 %1309  ;;  %1912 = vset.pattern.permute.xlu1 %v1977_v4 }
 0x355   : > { %v2138_v5 = vld [vmem:[#allocation2] sm:$0xff] }
 0x356   : > { %v2141_v6 = vmax.f32 %v2138_v5, %v1310_v3 }
 0x358   : > { %v1312_v7 = vsub.f32 %v2138_v5, %v2141_v6  ;;  %1394 = vst.msk [vmem:[#allocation2] sm:$0xff] %vm1329_vm7, %v2141_v6  ;;  %1317 = vperm.xlu0 %1911, %v2141_v6  }
 0x35a   : > { %v1313_v47 = vmul.f32 1.442695, %v1312_v7 }
 0x35b   : > { %v1449_v8 = vpop.xlane.xlu1 %1448 }
 0x35c   : > { %1914 = vset.pattern.permute.xlu0 %v1975_v53 }
 0x35f   : > { %v2149_v9 = vld [vmem:[#allocation2] sm:$0xff] }
 0x360   : > { %v2152_v10 = vmax.f32 %v2149_v9, %v1449_v8 }
 0x362   : > { %v1451_v11 = vsub.f32 %v2149_v9, %v2152_v10  ;;  %1533 = vst.msk [vmem:[#allocation2] sm:$0xff] %vm1468_vm8, %v2152_v10  ;;  %1456 = vperm.xlu1 %1912, %v2152_v10  }
 0x364   : > { %v1452_v52 = vmul.f32 1.442695, %v1451_v11 }
 0x366   : > { %1339 = vrot.lane.b32.xlu1 %v1785_v1, %s1973_s9  ;;  %s396_s9 = scalar_lea.vmem %s2244_s6, %s1767_s25 }
 0x367   : > { %1913 = vset.pattern.permute.xlu1 %v1971_v14 }
 0x36a   : > { %1478 = vrot.lane.b32.xlu1 %v1785_v1, %s1974_s10 }
 0x38e   : > { %1045 = vadd.xlane.f32.xlu1 %v1044_v12 }
 0x3c9   : > { %v1176_v13 = vpop.permute.xlu1 %1175 }
 0x3ca   : > { %v1178_v15 = vsub.f32 %v1164_v42, %v1176_v13 }
 0x3cc   : > { %v1179_v16 = vmul.f32 1.442695, %v1178_v15 }
 0x3cd   : > { %v1201_v18 = vpop.permute.xlu1 %1200 }
 0x3ce   : > { %1928 = vpow2.f32 %v1179_v16  ;;  %v1206_v21 = vsel %vm1061_vm5, %v1201_v18, 0 }
 0x3cf   : > { %1835 = vmatpush3.bf16.msra.mxu0 %v1206_v21 }
 0x3d0   : > { %1846 = vmatprep.subr.bf16.mxu0 %v1968_v0 }
 0x3d3   : > { %v1318_v22 = vpop.permute.xlu0 %1317 }
 0x3d4   : > { %v1320_v23 = vsub.f32 %v1306_v48, %v1318_v22 }
 0x3d6   : > { %v1321_v24 = vmul.f32 1.442695, %v1320_v23 }
 0x3d8   : > { %1930 = vpow2.f32 %v1321_v24  ;;  %v1925_v24 = vld [vmem:[%s2242_s4] sm:$0xff]  }
 0x3db   : > { %v1929_v25 = vpop.eup %1928 }
 0x3dc   : > { %v1183_v26 = vsel %vm978_vm1, %v1929_v25, 0.0  ;;  %v1196_v27 = vpack.c.bf16 %v1929_v25, %v1929_v25 }
 0x3dd   : > { %1184 = vadd.xlane.f32.xlu0 %v1183_v26  ;;  %v1457_v28 = vpop.permute.xlu1 %1456 }
 0x3de   : > { %v1459_v29 = vsub.f32 %v1445_v55, %v1457_v28  ;;  %1837 = vmatmul.mubr.msk.bf16.vlgmr.msra.gmra.mxu0 %vm978_vm1, %v1196_v27 }
 0x3df   : > { %1848 = vmatprep.mubr.msk.bf16.mxu0 %vm1969_vm0, %v1968_v0 }
 0x3e0   : > { %v1460_v30 = vmul.f32 1.442695, %v1459_v29 }
 0x3e1   : > { %v1340_v32 = vpop.permute.xlu1 %1339 }
 0x3e2   : > { %1932 = vpow2.f32 %v1460_v30  ;;  %v1345_v33 = vsel %vm1061_vm5, %v1340_v32, 0 }
 0x3e3   : > { %1847 = vmatpush3.bf16.msra.mxu0 %v1345_v33  ;;  %1934 = vpow2.f32 %v1171_v31 }
 0x3e4   : > { %1858 = vmatprep.subr.bf16.mxu0 %v1968_v0  ;;  %1936 = vpow2.f32 %v1032_v41 }
 0x3e5   : > { %v1931_v34 = vpop.eup %1930  ;;  %v1479_v35 = vpop.permute.xlu1 %1478  ;;  %1938 = vpow2.f32 %v1313_v47 }
 0x3e6   : > { %v1325_v36 = vsel %vm978_vm1, %v1931_v34, 0.0  ;;  %v1338_v38 = vpack.c.bf16 %v1931_v34, %v1931_v34  ;;  %v1484_v39 = vsel %vm1061_vm5, %v1479_v35, 0  ;;  %1940 = vpow2.f32 %v1452_v52 }
 0x3e7   : > { %1326 = vadd.xlane.f32.xlu1 %v1325_v36 }
 0x3e8   : > { %1849 = vmatmul.mubr.msk.bf16.vlgmr.msra.gmra.mxu0 %vm978_vm1, %v1338_v38 }
 0x3e9   : > { %1859 = vmatpush3.bf16.msra.mxu0 %v1484_v39  ;;  %1860 = vmatprep.mubr.msk.bf16.mxu0 %vm1969_vm0, %v1968_v0 }
 0x3ef   : > { %v1933_v40 = vpop.eup %1932 }
 0x3f0   : > { %v1464_v42 = vsel %vm978_vm1, %v1933_v40, 0.0  ;;  %v1477_v43 = vpack.c.bf16 %v1933_v40, %v1933_v40  ;;  %v1935_v44 = vpop.eup %1934 }
 0x3f1   : > { %1465 = vadd.xlane.f32.xlu1 %v1464_v42  ;;  %v1937_v45 = vpop.eup %1936 }
 0x3f2   : > { %1861 = vmatmul.mubr.msk.bf16.vlgmr.msra.gmra.mxu0 %vm978_vm1, %v1477_v43  ;;  %v1043_v19 = vmul.f32 %v1937_v45, %v1042_v17  ;;  %v1939_v54 = vpop.eup %1938 }
 0x3f3   : > { %1192 = vperm.xlu0 %1914, %v1935_v44   ;;  %v1941_v61 = vpop.eup %1940 }
 0x3f7   : > { %1921 = vset.pattern.permute.xlu0 %v1977_v4 }
 0x402   : > { %1053 = vperm.xlu1 %1913, %v1937_v45  }
 0x406   : > { %1915 = vset.pattern.permute.xlu1 %v1976_v60 }
 0x417   : > { %v1046_v20 = vpop.xlane.xlu1 %1045 }
 0x418   : > { %v1047_v46 = vadd.f32 %v1046_v20, %v1043_v19 }
 0x41a   : > { %1049 = vst.msk [vmem:[#allocation3] sm:$0xff] %vm1048_vm4, %v1047_v46 }
 0x421   : > { %v1181_v48 = vld [vmem:[#allocation3] sm:$0xff] }
 0x422   : > { %v1182_v49 = vmul.f32 %v1935_v44, %v1181_v48  ;;  %v1791_v48 = vld [vmem:[%s2243_s5] ss:$0 sm:$0xff] }
 0x466   : > { %v1185_v50 = vpop.xlane.xlu0 %1184 }
 0x467   : > { %v1186_v51 = vadd.f32 %v1185_v50, %v1182_v49  ;;  %v1634_v50 = vld [vmem:[%s389_s28] sm:$0xff] }
 0x469   : > { %1188 = vst.msk [vmem:[#allocation3] sm:$0xff] %vm1187_vm6, %v1186_v51 }
 0x46e   : > { %v1193_v25 = vpop.permute.xlu0 %1192 }
 0x470   : > { %v1323_v55 = vld [vmem:[#allocation3] sm:$0xff]  ;;  %v1327_v57 = vpop.xlane.xlu1 %1326 }
 0x471   : > { %v1324_v56 = vmul.f32 %v1939_v54, %v1323_v55 }
 0x473   : > { %v1328_v58 = vadd.f32 %v1327_v57, %v1324_v56 }
 0x475   : > { %1330 = vst.msk [vmem:[#allocation3] sm:$0xff] %vm1329_vm7, %v1328_v58 }
 0x47a   : > { %v1466_v59 = vpop.xlane.xlu1 %1465 }
 0x47c   : > { %v1462_v62 = vld [vmem:[#allocation3] sm:$0xff] }
 0x47d   : > { %v1463_v1 = vmul.f32 %v1941_v61, %v1462_v62 }
 0x47e   : > { %v1054_v2 = vpop.permute.xlu1 %1053 }
 0x47f   : > { %v1467_v3 = vadd.f32 %v1466_v59, %v1463_v1  ;;  %v1056_v5 = vmul.f32 %v1054_v2, %v1050_v63 }
 0x481   : > { %1469 = vst.msk [vmem:[#allocation3] sm:$0xff] %vm1468_vm8, %v1467_v3  ;;  %v1105_v6 = vadd.f32 %v2117_v37, %v1056_v5 }
 0x483   : > { %1106 = vst.msk [vmem:[#allocation4] sm:$0xff] %vm978_vm1, %v1105_v6 }
 0x488   : > { %v1534_v11 = vld [vmem:[#allocation3] sm:$0xff] }
 0x489   : > { %1942 = vrcp.f32 %v1534_v11 }
 0x496   : > { %v1943_v21 = vpop.eup %1942 }
 0x49e   : > { %v1242_v7 = vpop.f32.mrf.mxu0 }
 0x49f   : > { %1249 = vrot.lane.b32.xlu1 %v1242_v7, %s1978_s14 }
 0x4a0   : > { %v1838_v8 = vpop.f32.mrf.mxu0 }
 0x4a2   : > { %v1245_v9 = vpop.f32.mrf.mxu0 }
 0x4a3   : > { %1334 = vperm.xlu1 %1915, %v1939_v54  }
 0x4a4   : > { %v1839_v10 = vpop.f32.mrf.mxu0 }
 0x4a7   : > { %1916 = vset.pattern.permute.xlu1 %v1977_v4 }
 0x4a8   : > { %v1381_v12 = vpop.f32.mrf.mxu0 }
 0x4a9   : > { %1388 = vrot.lane.b32.xlu1 %v1381_v12, %s1979_s15 }
 0x4aa   : > { %v1850_v13 = vpop.f32.mrf.mxu0 }
 0x4ac   : > { %v1384_v15 = vpop.f32.mrf.mxu0 }
 0x4ad   : > { %1473 = vperm.xlu1 %1916, %v1941_v61  }
 0x4ae   : > { %v1851_v37 = vpop.f32.mrf.mxu0 }
 0x4b1   : > { %1917 = vset.pattern.permute.xlu1 %v1971_v14  ;;  %v1924_v14 = vld [vmem:[%s2242_s4 + $0x8] sm:$0xff]  }
 0x4b2   : > { %v1520_v16 = vpop.f32.mrf.mxu0  ;;  %1865 = vmatpush3.bf16.msra.mxu1 %v1924_v14 }
 0x4b3   : > { %1527 = vrot.lane.b32.xlu1 %v1520_v16, %s1980_s16  ;;  %1866 = vmatprep.subr.bf16.mxu1 %v1968_v0 }
 0x4b4   : > { %v1862_v18 = vpop.f32.mrf.mxu0 }
 0x4b6   : > { %v1523_v22 = vpop.f32.mrf.mxu0  ;;  %1867 = vmatpush3.bf16.msra.mxu1 %v1925_v24 }
 0x4b7   : > { %1539 = vperm.xlu1 %1917, %v1943_v21  }
 0x4b8   : > { %v1863_v23 = vpop.f32.mrf.mxu0 }
 0x4bb   : > { %1918 = vset.pattern.permute.xlu1 %v1975_v53  ;;  %v1189_v53 = vld [vmem:[#allocation4] sm:$0xff] }
 0x4bc   : > { %1546 = vperm.xlu1 %1918, %v1943_v21   ;;  %v1195_v26 = vmul.f32 %v1193_v25, %v1189_v53 }
 0x4c0   : > { %1919 = vset.pattern.permute.xlu1 %v1976_v60 }
 0x4c1   : > { %1553 = vperm.xlu1 %1919, %v1943_v21  }
 0x4c5   : > { %1920 = vset.pattern.permute.xlu1 %v1977_v4 }
 0x4c6   : > { %1560 = vperm.xlu1 %1920, %v1943_v21  }
 0x511   : > { %v1250_v60 = vpop.permute.xlu1 %1249 }
 0x512   : > { %v1252_v27 = vadd.f32 %v1250_v60, %v1195_v26 }
 0x514   : > { %1254 = vst.msk [vmem:[#allocation4] sm:$0xff] %vm1253_vm10, %v1252_v27 }
 0x51b   : > { %v1331_v28 = vld [vmem:[#allocation4] sm:$0xff] }
 0x51e   : > { %v1335_v4 = vpop.permute.xlu1 %1334 }
 0x51f   : > { %v1337_v29 = vmul.f32 %v1335_v4, %v1331_v28 }
 0x522   : > { %v1389_v30 = vpop.permute.xlu1 %1388 }
 0x523   : > { %v1391_v31 = vadd.f32 %v1389_v30, %v1337_v29 }
 0x525   : > { %1393 = vst.msk [vmem:[#allocation4] sm:$0xff] %vm1392_vm11, %v1391_v31 }
 0x528   : > { %v1474_v32 = vpop.permute.xlu1 %1473 }
 0x52c   : > { %v1470_v33 = vld [vmem:[#allocation4] sm:$0xff]  ;;  %v1528_v34 = vpop.permute.xlu1 %1527 }
 0x52d   : > { %v1476_v0 = vmul.f32 %v1474_v32, %v1470_v33 }
 0x52f   : > { %v1530_v35 = vadd.f32 %v1528_v34, %v1476_v0 }
 0x531   : > { %1532 = vst.msk [vmem:[#allocation4] sm:$0xff] %vm1531_vm12, %v1530_v35 }
 0x532   : > { %v1540_v38 = vpop.permute.xlu1 %1539 }
 0x537   : > { %v1547_v41 = vpop.permute.xlu1 %1546 }
 0x538   : > { %v1536_v36 = vld [vmem:[#allocation4] sm:$0xff] }
 0x539   : > { %v1542_v39 = vmul.f32 %v1540_v38, %v1536_v36 }
 0x53b   : > { %1543 = vst.msk [vmem:[#allocation4] sm:$0xff] %vm978_vm1, %v1542_v39 }
 0x53c   : > { %v1554_v44 = vpop.permute.xlu1 %1553 }
 0x541   : > { %v1561_v19 = vpop.permute.xlu1 %1560 }
 0x542   : > { %v1544_v40 = vld [vmem:[#allocation4] sm:$0xff] }
 0x543   : > { %v1549_v42 = vmul.f32 %v1547_v41, %v1544_v40 }
 0x545   : > { %1550 = vst.msk [vmem:[#allocation4] sm:$0xff] %vm1253_vm10, %v1549_v42 }
 0x54c   : > { %v1551_v43 = vld [vmem:[#allocation4] sm:$0xff] }
 0x54d   : > { %v1556_v45 = vmul.f32 %v1554_v44, %v1551_v43 }
 0x54f   : > { %1557 = vst.msk [vmem:[#allocation4] sm:$0xff] %vm1392_vm11, %v1556_v45 }
 0x556   : > { %v1558_v17 = vld [vmem:[#allocation4] sm:$0xff] }
 0x557   : > { %v1563_v20 = vmul.f32 %v1561_v19, %v1558_v17 }
 0x559   : > { %1564 = vst.msk [vmem:[#allocation4] sm:$0xff] %vm1531_vm12, %v1563_v20 }
 0x560   : > { %v1565_v46 = vld [vmem:[#allocation4] sm:$0xff] }
 0x561   : > { %v1566_v47 = vpack.c.bf16 %v1565_v46, %v1565_v46 }
 0x563   : > { %1869 = vmatmul.mubr.msk.bf16.vlgmr.msra.gmra.mxu1 %vm405_vm9, %v1566_v47 }
 0x623   : > { %v1628_v49 = vpop.f32.mrf.mxu1 }
 0x624   : > { %v1629_v51 = vadd.f32 %v1791_v48, %v1628_v49 }
 0x625   : > { %v1870_v52 = vpop.f32.mrf.mxu1 }
 0x626   : > { %v1635_v54 = vadd.f32 %v1634_v50, %v1629_v51 }
 0x627   : > { %v1631_v55 = vpop.f32.mrf.mxu1 }
 0x628   : > { %1636 = vst.msk [vmem:[%s396_s9] sm:$0xff] %vm405_vm9, %v1635_v54 }
 0x629   : > { %v1871_v56 = vpop.f32.mrf.mxu1 }
 0x62a PF: > { %s16_s23 = sadd.s32 1, %s1966_s23   ;;  %s2245_s21 = smov %s1962_s22 }
 0x62b   : > { %p13_p5 = scmp.ge.s32.totalorder %s16_s23, 4   ;;  %s2246_s22 = smov %s2248_s24 }
 0x62d   :  { %15 = sbr.rel (!%p13_p5) target bundleno = 2 (0x2), region = 95 }

</bundles_post_ra>
